<compile_context>
chip_gen: v5e
topology: v5e:2x2
jax: 0.10.0
libtpu: 0.0.40
codegen_flags: <defaults>
</compile_context>

<pallas_src>
import functools

import jax
import jax.numpy as jnp
from jax.experimental import pallas as pl
from jax.experimental.pallas import tpu as pltpu


def _round_up(x, m):
    return ((x + m - 1) // m) * m


# ----------------------------------------------------------------------------
# Pallas kernel: batched fused DGCNN forward (2 MXU matmuls + ReLU + sigmoid)
# ----------------------------------------------------------------------------
def _dgcnn_kernel(x_ref, g_ref, bgc_ref, wfc_ref, bfc_ref, fw_ref, cls_ref, *,
                  use_sig_fw, use_sig_cls, ecc_coeff):
    # x_ref:   (TB, N*F)  batch tile of flattened inputs (BN folded into G)
    # g_ref:   (N*F, N*H) fused (BN-scale * supports * graph-conv-weight) operator
    # bgc_ref: (1, N*H)   fused BN-shift bias
    # wfc_ref: (N*H, OW)  FC weight, lane-padded with zeros to OW (mult. of 128)
    # bfc_ref: (1, OW)    FC bias, lane-padded with zeros
    x = x_ref[...]
    acc = jnp.dot(x, g_ref[...], preferred_element_type=jnp.float32)
    h = jnp.maximum(acc + bgc_ref[...], 0.0)                       # (TB, N*H)
    y = jnp.dot(h, wfc_ref[...], preferred_element_type=jnp.float32)
    y = y + bfc_ref[...]                                           # (TB, OW)

    fw_ref[...] = jax.nn.sigmoid(ecc_coeff * y) if use_sig_fw else y
    cls_ref[...] = jax.nn.sigmoid(y) if use_sig_cls else y


# ----------------------------------------------------------------------------
# Glue: adjacency normalization, supports, parameter init
# ----------------------------------------------------------------------------
def _normalize_adjacency(adj):
    adj = jnp.maximum(adj, 0.0)
    d = jnp.sum(adj, axis=1)
    d = 1.0 / jnp.sqrt(d + 1e-10)
    return d[:, None] * adj * d[None, :]


def _cheby_supports(lap, k_order):
    # TODO(synk): torcheeg-style DGCNN builds its supports as plain matrix
    # powers (support[-1] @ L); the true Chebyshev recurrence
    # T_k = 2 L T_{k-1} - T_{k-2} would differ for K > 2. Verify against the
    # actual DGCNN_Model source.
    supports = [jnp.eye(lap.shape[0], dtype=lap.dtype)]
    if k_order > 1:
        supports.append(lap)
    for _ in range(2, k_order):
        supports.append(supports[-1] @ lap)
    return jnp.stack(supports[:k_order], axis=0)


def init_dgcnn_embedder_params(key, *, num_channels, num_features_per_node,
                               num_graph_conv_layers, num_hidden_nodes,
                               num_factors):
    keys = jax.random.split(key, 4)
    return {
        # learnable adjacency over electrodes/channels
        "A": jax.random.normal(keys[0], (num_channels, num_channels),
                               jnp.float32) * 0.1,
        # graph-conv weights, one per support
        "W_gc": jax.random.normal(
            keys[1],
            (num_graph_conv_layers, num_features_per_node, num_hidden_nodes),
            jnp.float32) * 0.1,
        # fully-connected head (PyTorch fc.weight is (NF, N*H); kept 3D here)
        "W_fc": jax.random.normal(
            keys[2], (num_factors, num_channels, num_hidden_nodes),
            jnp.float32) * 0.05,
        "b_fc": jax.random.normal(keys[3], (1, num_factors), jnp.float32) * 0.05,
        # BatchNorm1d(num_features_per_node) defaults (eval mode)
        "bn_gamma": jnp.ones((1, num_features_per_node), jnp.float32),
        "bn_beta": jnp.zeros((1, num_features_per_node), jnp.float32),
        "bn_mean": jnp.zeros((1, num_features_per_node), jnp.float32),
        "bn_var": jnp.ones((1, num_features_per_node), jnp.float32),
    }


# ----------------------------------------------------------------------------
# Wrapper: fold params, tile batch, call the kernel, slice lane-padded outputs
# ----------------------------------------------------------------------------
def dgcnn_embedder_forward(X, params, *, num_channels, num_features_per_node,
                           num_graph_conv_layers, num_hidden_nodes,
                           num_factors, num_classes, use_sigmoid_restriction,
                           sigmoid_eccentricity_coeff,
                           use_final_activation=True, batch_tile=None):
    assert X.ndim == 3
    # Replicate the transpose guard from DGCNN_Embedder.forward.
    if X.shape[2] != num_features_per_node:
        assert X.shape[1] == num_features_per_node
        X = jnp.transpose(X, (0, 2, 1))
    B, N, F = X.shape
    assert N == num_channels and F == num_features_per_node
    H = num_hidden_nodes
    NF = num_factors
    NC = num_classes
    assert 0 <= NC <= NF, "num_classes must be <= num_factors"

    f32 = jnp.float32
    hp = jax.lax.Precision.HIGHEST
    X = X.astype(f32)

    # --- fold BatchNorm (eval) + supports + W_gc into one operator (tiny) ----
    eps = 1e-5
    bn_scale = (params["bn_gamma"] / jnp.sqrt(params["bn_var"] + eps))[0]     # (F,)
    bn_shift = (params["bn_beta"][0] - params["bn_mean"][0] * bn_scale)       # (F,)

    lap = _normalize_adjacency(params["A"].astype(f32))
    a_cheb = _cheby_supports(lap, num_graph_conv_layers)                      # (K,N,N)

    # G[m, f, n, h] = sum_k A_k[n, m] * Wk[f, h]
    G = jnp.einsum("knm,kfh->mfnh", a_cheb, params["W_gc"].astype(f32),
                   precision=hp)                                              # (N,F,N,H)
    bias_gc = jnp.einsum("f,mfnh->nh", bn_shift, G, precision=hp)             # (N,H)
    G_fused = (G * bn_scale[None, :, None, None]).reshape(N * F, N * H)
    bias_gc = bias_gc.reshape(1, N * H)

    # FC weight: (NF, N, H) -> (N*H, NF), lane-padded to OW (multiple of 128).
    OW = _round_up(max(NF, 1), 128)
    wfc = jnp.transpose(params["W_fc"].astype(f32), (1, 2, 0)).reshape(N * H, NF)
    wfc = jnp.pad(wfc, ((0, 0), (0, OW - NF)))
    bfc = jnp.pad(params["b_fc"].astype(f32).reshape(1, NF),
                  ((0, 0), (0, OW - NF)))

    # --- batch tiling: many samples per grid step, sublane-aligned ----------
    if batch_tile is None:
        # Big enough to amortize per-step overhead, small enough for v7x's
        # 64 MiB VMEM (double-buffered X tile = 2 * TB * N * F * 4 bytes).
        batch_tile = 256 if B >= 256 else _round_up(B, 8)
    TB = batch_tile
    B_pad = _round_up(B, TB)
    X_flat = jnp.pad(X.reshape(B, N * F), ((0, B_pad - B), (0, 0)))

    use_sig_fw = bool(use_sigmoid_restriction)
    use_sig_cls = bool(use_sigmoid_restriction) and bool(use_final_activation)
    ecc = float(sigmoid_eccentricity_coeff) if use_sigmoid_restriction else 1.0

    kernel = functools.partial(_dgcnn_kernel, use_sig_fw=use_sig_fw,
                               use_sig_cls=use_sig_cls, ecc_coeff=ecc)

    NFin = N * F
    NH = N * H
    fw_slab, cls_slab = pl.pallas_call(
        kernel,
        out_shape=(
            jax.ShapeDtypeStruct((B_pad, OW), f32),
            jax.ShapeDtypeStruct((B_pad, OW), f32),
        ),
        grid_spec=pltpu.PrefetchScalarGridSpec(
            num_scalar_prefetch=0,
            grid=(B_pad // TB,),
            in_specs=[
                pl.BlockSpec((TB, NFin), lambda i: (i, 0)),   # X batch tile
                pl.BlockSpec((NFin, NH), lambda i: (0, 0)),   # fused gc operator
                pl.BlockSpec((1, NH), lambda i: (0, 0)),      # fused gc bias
                pl.BlockSpec((NH, OW), lambda i: (0, 0)),     # fc weight (padded)
                pl.BlockSpec((1, OW), lambda i: (0, 0)),      # fc bias (padded)
            ],
            out_specs=[
                pl.BlockSpec((TB, OW), lambda i: (i, 0)),     # factor weightings
                pl.BlockSpec((TB, OW), lambda i: (i, 0)),     # class outputs
            ],
        ),
        compiler_params=pltpu.CompilerParams(
            dimension_semantics=("parallel",)),
    )(X_flat, G_fused, bias_gc, wfc, bfc)

    factor_weightings = fw_slab[:B, :NF]
    out_class_logits = cls_slab[:B, :NC] if NC > 0 else None
    return factor_weightings, out_class_logits


# ----------------------------------------------------------------------------
# Pure-JAX reference (unfused math) for a correctness check
# ----------------------------------------------------------------------------
def _reference_forward(X, params, *, num_features_per_node,
                       num_graph_conv_layers, num_classes,
                       use_sigmoid_restriction, sigmoid_eccentricity_coeff,
                       use_final_activation=True):
    if X.shape[2] != num_features_per_node:
        X = jnp.transpose(X, (0, 2, 1))
    hp = jax.lax.Precision.HIGHEST
    eps = 1e-5
    s = params["bn_gamma"] / jnp.sqrt(params["bn_var"] + eps)
    t = params["bn_beta"] - params["bn_mean"] * s
    xn = X * s + t                                                   # (B,N,F)
    lap = _normalize_adjacency(params["A"])
    a_cheb = _cheby_supports(lap, num_graph_conv_layers)
    acc = jnp.einsum("knm,bmf,kfh->bnh", a_cheb, xn, params["W_gc"],
                     precision=hp)
    h = jnp.maximum(acc, 0.0)
    y = jnp.einsum("bnh,fnh->bf", h, params["W_fc"], precision=hp)
    y = y + params["b_fc"]
    cls = y[:, :num_classes] if num_classes > 0 else None
    if use_sigmoid_restriction:
        if use_final_activation and cls is not None:
            cls = jax.nn.sigmoid(cls)
        y = jax.nn.sigmoid(sigmoid_eccentricity_coeff * y)
    return y, cls


if __name__ == "__main__":
    jax.config.update("jax_default_matmul_precision", "highest")

    # Small, module-consistent shapes.
    num_channels = 16            # graph nodes / electrodes
    num_wavelets_per_chan = 8    # unused by this forward (see TODO above)
    num_features_per_node = 8
    num_graph_conv_layers = 2
    num_hidden_nodes = 32
    num_factors = 6
    num_classes = 4
    sigmoid_eccentricity_coeff = 2.0
    use_sigmoid_restriction = True
    batch = 2

    key = jax.random.PRNGKey(0)
    k_param, k_x = jax.random.split(key)
    params = init_dgcnn_embedder_params(
        k_param,
        num_channels=num_channels,
        num_features_per_node=num_features_per_node,
        num_graph_conv_layers=num_graph_conv_layers,
        num_hidden_nodes=num_hidden_nodes,
        num_factors=num_factors,
    )

    # Input in (batch, nodes, features) layout.
    X = jax.random.normal(k_x, (batch, num_channels, num_features_per_node),
                          jnp.float32)

    fw, cls = dgcnn_embedder_forward(
        X, params,
        num_channels=num_channels,
        num_features_per_node=num_features_per_node,
        num_graph_conv_layers=num_graph_conv_layers,
        num_hidden_nodes=num_hidden_nodes,
        num_factors=num_factors,
        num_classes=num_classes,
        use_sigmoid_restriction=use_sigmoid_restriction,
        sigmoid_eccentricity_coeff=sigmoid_eccentricity_coeff,
        use_final_activation=True,
    )
    jax.block_until_ready((fw, cls))
    assert fw.shape == (batch, num_factors)
    assert cls.shape == (batch, num_classes)
    assert bool(jnp.all(jnp.isfinite(fw))) and bool(jnp.all(jnp.isfinite(cls)))

    # Validate against the unfused pure-JAX reference.
    fw_ref, cls_ref = _reference_forward(
        X, params,
        num_features_per_node=num_features_per_node,
        num_graph_conv_layers=num_graph_conv_layers,
        num_classes=num_classes,
        use_sigmoid_restriction=use_sigmoid_restriction,
        sigmoid_eccentricity_coeff=sigmoid_eccentricity_coeff,
        use_final_activation=True,
    )
    assert float(jnp.max(jnp.abs(fw - fw_ref))) < 1e-2
    assert float(jnp.max(jnp.abs(cls - cls_ref))) < 1e-2

    print("KERNEL_OK")
</pallas_src>

<mosaic_0001>
module attributes {stable_mosaic.version = 11 : i64} {
  func.func @_dgcnn_kernel(%arg0: i32, %arg1: memref<8x128xf32, #tpu.memory_space<vmem>>, %arg2: memref<128x512xf32, #tpu.memory_space<vmem>>, %arg3: memref<1x512xf32, #tpu.memory_space<vmem>>, %arg4: memref<512x128xf32, #tpu.memory_space<vmem>>, %arg5: memref<1x128xf32, #tpu.memory_space<vmem>>, %arg6: memref<8x128xf32, #tpu.memory_space<vmem>>, %arg7: memref<8x128xf32, #tpu.memory_space<vmem>>) attributes {dimension_semantics = [#tpu.dimension_semantics<parallel>], iteration_bounds = array<i64: 1>, scalar_prefetch = 0 : i64, scratch_operands = 0 : i64, tpu.core_type = #tpu.core_type<tc>, window_params = [{transform_indices = @transform_0, window_bounds = array<i64: 8, 128>}, {pipeline_mode = #tpu.pipeline_mode<synchronous>, transform_indices = @transform_1, window_bounds = array<i64: 128, 512>}, {pipeline_mode = #tpu.pipeline_mode<synchronous>, transform_indices = @transform_2, window_bounds = array<i64: 1, 512>}, {pipeline_mode = #tpu.pipeline_mode<synchronous>, transform_indices = @transform_3, window_bounds = array<i64: 512, 128>}, {pipeline_mode = #tpu.pipeline_mode<synchronous>, transform_indices = @transform_4, window_bounds = array<i64: 1, 128>}, {transform_indices = @transform_5, window_bounds = array<i64: 8, 128>}, {transform_indices = @transform_6, window_bounds = array<i64: 8, 128>}]} {
    %c0 = arith.constant 0 : index
    %c0_0 = arith.constant 0 : index
    %0 = vector.load %arg1[%c0, %c0_0] : memref<8x128xf32, #tpu.memory_space<vmem>>, vector<8x128xf32>
    %c0_1 = arith.constant 0 : index
    %c0_2 = arith.constant 0 : index
    %1 = vector.load %arg2[%c0_1, %c0_2] : memref<128x512xf32, #tpu.memory_space<vmem>>, vector<128x512xf32>
    %cst = arith.constant dense<0.000000e+00> : vector<8x512xf32>
    %2 = tpu.matmul %0, %1, %cst {dimension_numbers = #tpu.dot_dimension_numbers<[1], [0], [0], [1], [0, 0, 1, 1], [], []>, precision = #tpu.contract_precision<fp32>} : vector<8x128xf32>, vector<128x512xf32>, vector<8x512xf32> -> vector<8x512xf32>
    %c0_3 = arith.constant 0 : index
    %c0_4 = arith.constant 0 : index
    %3 = vector.load %arg3[%c0_3, %c0_4] : memref<1x512xf32, #tpu.memory_space<vmem>>, vector<1x512xf32>
    %4 = vector.broadcast %3 : vector<1x512xf32> to vector<8x512xf32>
    %5 = arith.addf %2, %4 : vector<8x512xf32>
    %cst_5 = arith.constant 0.000000e+00 : f32
    %6 = vector.broadcast %cst_5 : f32 to vector<8x512xf32>
    %7 = arith.maximumf %5, %6 : vector<8x512xf32>
    %c0_6 = arith.constant 0 : index
    %c0_7 = arith.constant 0 : index
    %8 = vector.load %arg4[%c0_6, %c0_7] : memref<512x128xf32, #tpu.memory_space<vmem>>, vector<512x128xf32>
    %cst_8 = arith.constant dense<0.000000e+00> : vector<8x128xf32>
    %9 = tpu.matmul %7, %8, %cst_8 {dimension_numbers = #tpu.dot_dimension_numbers<[1], [0], [0], [1], [0, 0, 1, 1], [], []>, precision = #tpu.contract_precision<fp32>} : vector<8x512xf32>, vector<512x128xf32>, vector<8x128xf32> -> vector<8x128xf32>
    %c0_9 = arith.constant 0 : index
    %c0_10 = arith.constant 0 : index
    %10 = vector.load %arg5[%c0_9, %c0_10] : memref<1x128xf32, #tpu.memory_space<vmem>>, vector<1x128xf32>
    %11 = vector.broadcast %10 : vector<1x128xf32> to vector<8x128xf32>
    %12 = arith.addf %9, %11 : vector<8x128xf32>
    %cst_11 = arith.constant 2.000000e+00 : f32
    %13 = vector.broadcast %cst_11 : f32 to vector<8x128xf32>
    %14 = arith.mulf %13, %12 : vector<8x128xf32>
    %15 = arith.negf %14 : vector<8x128xf32>
    %16 = math.exp %15 : vector<8x128xf32>
    %cst_12 = arith.constant 1.000000e+00 : f32
    %17 = vector.broadcast %cst_12 : f32 to vector<8x128xf32>
    %18 = arith.addf %17, %16 : vector<8x128xf32>
    %19 = arith.divf %17, %18 : vector<8x128xf32>
    %c0_13 = arith.constant 0 : index
    %c0_14 = arith.constant 0 : index
    %20 = vector.load %arg6[%c0_13, %c0_14] : memref<8x128xf32, #tpu.memory_space<vmem>>, vector<8x128xf32>
    tpu.vector_store %arg6[%c0_13, %c0_14], %19 {strides = array<i32>} : memref<8x128xf32, #tpu.memory_space<vmem>>, vector<8x128xf32>,
    %21 = arith.negf %12 : vector<8x128xf32>
    %22 = math.exp %21 : vector<8x128xf32>
    %cst_15 = arith.constant 1.000000e+00 : f32
    %23 = vector.broadcast %cst_15 : f32 to vector<8x128xf32>
    %24 = arith.addf %23, %22 : vector<8x128xf32>
    %25 = arith.divf %23, %24 : vector<8x128xf32>
    %c0_16 = arith.constant 0 : index
    %c0_17 = arith.constant 0 : index
    %26 = vector.load %arg7[%c0_16, %c0_17] : memref<8x128xf32, #tpu.memory_space<vmem>>, vector<8x128xf32>
    tpu.vector_store %arg7[%c0_16, %c0_17], %25 {strides = array<i32>} : memref<8x128xf32, #tpu.memory_space<vmem>>, vector<8x128xf32>,
    return
  }
  func.func @transform_0(%arg0: i32) -> (i32, i32) {
    %c0_i32 = arith.constant 0 : i32
    %c0_i32_0 = arith.constant 0 : i32
    return %arg0, %c0_i32 : i32, i32
  }
  func.func @transform_1(%arg0: i32) -> (i32, i32) {
    %c0_i32 = arith.constant 0 : i32
    %c0_i32_0 = arith.constant 0 : i32
    %c0_i32_1 = arith.constant 0 : i32
    return %c0_i32, %c0_i32_0 : i32, i32
  }
  func.func @transform_2(%arg0: i32) -> (i32, i32) {
    %c0_i32 = arith.constant 0 : i32
    %c0_i32_0 = arith.constant 0 : i32
    %c0_i32_1 = arith.constant 0 : i32
    return %c0_i32, %c0_i32_0 : i32, i32
  }
  func.func @transform_3(%arg0: i32) -> (i32, i32) {
    %c0_i32 = arith.constant 0 : i32
    %c0_i32_0 = arith.constant 0 : i32
    %c0_i32_1 = arith.constant 0 : i32
    return %c0_i32, %c0_i32_0 : i32, i32
  }
  func.func @transform_4(%arg0: i32) -> (i32, i32) {
    %c0_i32 = arith.constant 0 : i32
    %c0_i32_0 = arith.constant 0 : i32
    %c0_i32_1 = arith.constant 0 : i32
    return %c0_i32, %c0_i32_0 : i32, i32
  }
  func.func @transform_5(%arg0: i32) -> (i32, i32) {
    %c0_i32 = arith.constant 0 : i32
    %c0_i32_0 = arith.constant 0 : i32
    return %arg0, %c0_i32 : i32, i32
  }
  func.func @transform_6(%arg0: i32) -> (i32, i32) {
    %c0_i32 = arith.constant 0 : i32
    %c0_i32_0 = arith.constant 0 : i32
    return %arg0, %c0_i32 : i32, i32
  }
}

</mosaic_0001>

<bundles_post_ra>
// kernel: tpu_custom_call.1
= control target key start
LH: loop header
LB: loop body
LE: loop exit
PB: predicated region body
PF: predicated region fallthrough
CT: control target
= control target key end

     0   :  { %12 = vsyncpa [#allocation3], 0  ;;  %s5303_s0 = inlined_call_operand.hbm [shape: f32[8,128], index: 0, kind: input, shape index: {}]   ;;  %s5304_s1 = inlined_call_operand.hbm [shape: f32[128,512], index: 1, kind: input, shape index: {}]   ;;  %s5305_s2 = inlined_call_operand.hbm [shape: f32[1,512], index: 2, kind: input, shape index: {}]   ;;  %s5306_s3 = inlined_call_operand.hbm [shape: f32[512,128], index: 3, kind: input, shape index: {}]   ;;  %s5307_s4 = inlined_call_operand.vmem [shape: f32[1,128], index: 4, kind: input, shape index: {}]   ;;  %s5308_s5 = inlined_call_operand.hbm [shape: f32[8,128], index: 5, kind: output, shape index: {0}]   ;;  %s5309_s6 = inlined_call_operand.hbm [shape: f32[8,128], index: 6, kind: output, shape index: {1}]  }
   0x1   :  { %13 = vsyncpa [#allocation6], 0 }
   0x2   :  { %14 = vsyncpa [#allocation9], 0 }
   0x3   :  { %15 = vsyncpa [#allocation4], 0  ;;  %s32_s23 = sshll.u32 %s5304_s1, 4  ;;  %s33_s23 = int_to_ptr.hbm [resolvable:$true] %s32_s23 }
   0x4   :  { %16 = vsyncpa [#allocation12], 0  ;;  %s3210_s24 = smov [#allocation5]   ;;  %s22_s28 = sshll.u32 %s5303_s0, 4  ;;  %s23_s28 = int_to_ptr.hbm [resolvable:$true] %s22_s28 }
   0x5   :  { %s34_s25 = sshll.u32 %s3210_s24, 4  ;;  %s3211_s29 = smov 512   ;;  %s35_s25 = int_to_ptr.vmem [resolvable:$true] %s34_s25 }
   0x6   :  { %s3212_s30 = smov 32   ;;  %s3213_s7 = smov [#allocation2]  }
   0x7   :  { %40 = dma.hbm_to_vmem [thread:$0]  %s33_s23, 8192, %s35_s25, [#allocation6], %s3211_s29, %s3211_s29, %s3212_s30  }
   0x8   :  { %s24_s8 = sshll.u32 %s3213_s7, 4  ;;  %s46_s11 = sshll.u32 %s5305_s2, 4  ;;  %s25_s8 = int_to_ptr.vmem [resolvable:$true] %s24_s8  ;;  %s47_s11 = int_to_ptr.hbm [resolvable:$true] %s46_s11 }
   0x9   :  { %27 = dma.hbm_to_vmem [thread:$0]  %s23_s28, 128, %s25_s8, [#allocation3]  }
   0xa   :  { %s56_s13 = sshll.u32 %s5306_s3, 4  ;;  %s3214_s14 = smov [#allocation7]   ;;  %s57_s13 = int_to_ptr.hbm [resolvable:$true] %s56_s13 }
   0xb   :  { %s48_s15 = sshll.u32 %s3214_s14, 4  ;;  %s3215_s0 = smov [#allocation8]   ;;  %s49_s15 = int_to_ptr.vmem [resolvable:$true] %s48_s15 }
   0xc   :  { %51 = dma.hbm_to_vmem [thread:$0]  %s47_s11, 64, %s49_s15, [#allocation6]  }
   0xd   :  { %s58_s16 = sshll.u32 %s3215_s0, 4  ;;  %s3216_s17 = smov 128   ;;  %s59_s16 = int_to_ptr.vmem [resolvable:$true] %s58_s16 }
   0xe   :  { %s3217_s18 = smov 8  }
   0xf   :  { %64 = dma.hbm_to_vmem [thread:$0]  %s57_s13, 8192, %s59_s16, [#allocation9], %s3216_s17, %s3216_s17, %s3217_s18  }
  0x10   :  { %3200 = dma.done.wait [#allocation3], 128  }
  0x11   :  { %3201 = vsyncadd [#allocation3], 4294967168 }
  0x12   :  { %3202 = dma.done.wait [#allocation6], 8256  }
  0x13   :  { %3203 = vsyncadd [#allocation6], 4294959040 }
  0x14   :  { %3204 = dma.done.wait [#allocation9], 8192  }
  0x15   :  { %3205 = vsyncadd [#allocation9], 4294959104  ;;  %v144_v0 = vld [vmem:[#allocation5 + $0x1e0] sm:$0xff]  ;;  %v145_v56 = vld [vmem:[#allocation5 + $0x1e8] sm:$0xff]  ;;  %s3017_s22 = sshll.u32 %s5309_s6, 4  ;;  %s3219_s23 = smov [#allocation10]   ;;  %s3018_s22 = int_to_ptr.hbm [resolvable:$true] %s3017_s22 }
  0x16   :  { %v140_v1 = vld [vmem:[#allocation5 + $0x1c0] sm:$0xff]  ;;  %v3267_v3 = vand.u32 4294901760, %v144_v0  ;;  %v141_v60 = vld [vmem:[#allocation5 + $0x1c8] sm:$0xff]  ;;  %s3004_s24 = sshll.u32 %s3219_s23, 4  ;;  %s3006_s27 = sshll.u32 %s5308_s5, 4  ;;  %s3005_s24 = int_to_ptr.vmem [resolvable:$true] %s3004_s24  ;;  %s3007_s27 = int_to_ptr.hbm [resolvable:$true] %s3006_s27 }
  0x17   :  { %v136_v2 = vld [vmem:[#allocation5 + $0x1a0] sm:$0xff]  ;;  %v3269_v4 = vand.u32 4294901760, %v140_v1 }
  0x18   :  { %v3271_v5 = vand.u32 4294901760, %v136_v2  ;;  %v132_v6 = vld [vmem:[#allocation5 + $0x180] sm:$0xff]  ;;  %159 = vmatpush.msra.mxu0 %v3267_v3  ;;  %355 = vmatpush.msra.mxu3 %v3267_v3  ;;  %v3282_v14 = vsub.f32 %v144_v0, %v3267_v3 }
  0x19   :  { %v128_v7 = vld [vmem:[#allocation5 + $0x160] sm:$0xff]  ;;  %v3273_v9 = vand.u32 4294901760, %v132_v6  ;;  %v3285_v15 = vsub.f32 %v140_v1, %v3269_v4 }
  0x1a   :  { %v124_v8 = vld [vmem:[#allocation5 + $0x140] sm:$0xff]  ;;  %v3275_v10 = vand.u32 4294901760, %v128_v7  ;;  %v3288_v16 = vsub.f32 %v136_v2, %v3271_v5  ;;  %161 = vmatpush.msra.mxu0 %v3269_v4  ;;  %302 = vmatpush.msra.mxu2 %v3282_v14  ;;  %v5324_v23 = vand.u32 4294901760, %v3282_v14 }
  0x1b   :  { %v3277_v11 = vand.u32 4294901760, %v124_v8  ;;  %v120_v12 = vld [vmem:[#allocation5 + $0x120] sm:$0xff]  ;;  %v3293_v19 = vsub.f32 %v132_v6, %v3273_v9  ;;  %v5322_v24 = vand.u32 4294901760, %v3285_v15  ;;  %357 = vmatpush.msra.mxu3 %v3269_v4  ;;  %v3386_v6 = vand.u32 4294901760, %v145_v56 }
  0x1c   :  { %v116_v13 = vld [vmem:[#allocation5 + $0x100] sm:$0xff]  ;;  %v3290_v17 = vand.u32 4294901760, %v120_v12  ;;  %v3296_v20 = vsub.f32 %v128_v7, %v3275_v10  ;;  %v5321_v25 = vand.u32 4294901760, %v3288_v16  ;;  %163 = vmatpush.msra.mxu0 %v3271_v5  ;;  %305 = vmatpush.msra.mxu2 %v3285_v15  ;;  %v202_v30 = vsub.f32 %v3282_v14, %v5324_v23  ;;  %v137_v7 = vld [vmem:[#allocation5 + $0x1a8] sm:$0xff] }
  0x1d   :  { %v112_v18 = vld [vmem:[#allocation5 + $0xe0] sm:$0xff]  ;;  %v3299_v21 = vsub.f32 %v124_v8, %v3277_v11  ;;  %v3301_v22 = vand.u32 4294901760, %v116_v13  ;;  %v5320_v26 = vand.u32 4294901760, %v3293_v19  ;;  %v208_v31 = vsub.f32 %v3285_v15, %v5322_v24  ;;  %359 = vmatpush.msra.mxu3 %v3271_v5  ;;  %v109_v24 = vld [vmem:[#allocation5 + $0xc8] sm:$0xff] }
  0x1e   :  { %v3311_v27 = vsub.f32 %v120_v12, %v3290_v17  ;;  %v3313_v28 = vand.u32 4294901760, %v112_v18  ;;  %v108_v29 = vld [vmem:[#allocation5 + $0xc0] sm:$0xff]  ;;  %v214_v32 = vsub.f32 %v3288_v16, %v5321_v25  ;;  %v5319_v33 = vand.u32 4294901760, %v3296_v20  ;;  %165 = vmatpush.msra.mxu0 %v3273_v9  ;;  %308 = vmatpush.msra.mxu2 %v3288_v16 }
  0x1f   :  { %v3329_v34 = vsub.f32 %v116_v13, %v3301_v22  ;;  %v5316_v35 = vand.u32 4294901760, %v3299_v21  ;;  %v104_v36 = vld [vmem:[#allocation5 + $0xa0] sm:$0xff]  ;;  %v203_v37 = vand.u32 4294901760, %v202_v30  ;;  %v209_v38 = vand.u32 4294901760, %v208_v31  ;;  %361 = vmatpush.msra.mxu3 %v3273_v9 }
  0x20   :  { %v220_v39 = vsub.f32 %v3293_v19, %v5320_v26  ;;  %v3337_v40 = vand.u32 4294901760, %v108_v29  ;;  %v3341_v41 = vsub.f32 %v112_v18, %v3313_v28  ;;  %v5315_v42 = vand.u32 4294901760, %v3311_v27  ;;  %v100_v43 = vld [vmem:[#allocation5 + $0x80] sm:$0xff]  ;;  %167 = vmatpush.msra.mxu0 %v3275_v10  ;;  %311 = vmatpush.msra.mxu2 %v3293_v19  ;;  %v113_v26 = vld [vmem:[#allocation5 + $0xe8] sm:$0xff] }
  0x21   :  { %204 = vmatpush.msra.mxu1 %v203_v37  ;;  %v215_v44 = vand.u32 4294901760, %v214_v32  ;;  %v226_v45 = vsub.f32 %v3296_v20, %v5319_v33  ;;  %v3348_v46 = vand.u32 4294901760, %v104_v36  ;;  %363 = vmatpush.msra.mxu3 %v3275_v10  ;;  %v232_v47 = vsub.f32 %v3299_v21, %v5316_v35  ;;  %v96_v49 = vld [vmem:[#allocation5 + $0x60] sm:$0xff]  ;;  %v117_v35 = vld [vmem:[#allocation5 + $0x108] sm:$0xff] }
  0x22   :  { %v5313_v48 = vand.u32 4294901760, %v3329_v34  ;;  %169 = vmatpush.msra.mxu0 %v3277_v11  ;;  %v221_v50 = vand.u32 4294901760, %v220_v39  ;;  %v3358_v51 = vsub.f32 %v108_v29, %v3337_v40  ;;  %v3360_v52 = vand.u32 4294901760, %v100_v43  ;;  %314 = vmatpush.msra.mxu2 %v3296_v20  ;;  %v92_v55 = vld [vmem:[#allocation5 + $0x40] sm:$0xff] }
  0x23   :  { %210 = vmatpush.msra.mxu1 %v209_v38  ;;  %365 = vmatpush.msra.mxu3 %v3277_v11  ;;  %v238_v53 = vsub.f32 %v3311_v27, %v5315_v42  ;;  %v5312_v54 = vand.u32 4294901760, %v3341_v41  ;;  %v227_v57 = vand.u32 4294901760, %v226_v45  ;;  %v3370_v58 = vsub.f32 %v104_v36, %v3348_v46  ;;  %v88_v63 = vld [vmem:[#allocation5 + $0x20] sm:$0xff]  ;;  %v133_v36 = vld [vmem:[#allocation5 + $0x188] sm:$0xff] }
  0x24   :  { %171 = vmatpush.msra.mxu0 %v3290_v17  ;;  %v3372_v59 = vand.u32 4294901760, %v96_v49  ;;  %317 = vmatpush.msra.mxu2 %v3299_v21  ;;  %v233_v61 = vand.u32 4294901760, %v232_v47  ;;  %v244_v62 = vsub.f32 %v3329_v34, %v5313_v48  ;;  %v3381_v0 = vsub.f32 %v100_v43, %v3360_v52  ;;  %v84_v13 = vld [vmem:[#allocation5] sm:$0xff]  ;;  %v129_v47 = vld [vmem:[#allocation5 + $0x168] sm:$0xff] }
  0x25   :  { %216 = vmatpush.msra.mxu1 %v215_v44  ;;  %367 = vmatpush.msra.mxu3 %v3290_v17  ;;  %v3383_v1 = vand.u32 4294901760, %v92_v55  ;;  %v5311_v2 = vand.u32 4294901760, %v3358_v51  ;;  %v239_v8 = vand.u32 4294901760, %v238_v53  ;;  %v250_v12 = vsub.f32 %v3341_v41, %v5312_v54  ;;  %v121_v54 = vld [vmem:[#allocation5 + $0x128] sm:$0xff] }
  0x26   :  { %5433 = vst [vmem:[#allocation18_spill] sm:$0xff] %v3372_v59  ;;  %173 = vmatpush.msra.mxu0 %v3301_v22  ;;  %320 = vmatpush.msra.mxu2 %v3311_v27  ;;  %v3393_v18 = vand.u32 4294901760, %v141_v60  ;;  %v3397_v29 = vsub.f32 %v96_v49, %v3372_v59  ;;  %v3399_v30 = vand.u32 4294901760, %v88_v63  ;;  %v5310_v31 = vand.u32 4294901760, %v3370_v58 }
  0x27   :  { %222 = vmatpush.msra.mxu1 %v221_v50  ;;  %5434 = vst [vmem:[#allocation19_spill] sm:$0xff] %v3383_v1  ;;  %369 = vmatpush.msra.mxu3 %v3301_v22  ;;  %v3403_v32 = vsub.f32 %v145_v56, %v3386_v6  ;;  %v245_v37 = vand.u32 4294901760, %v244_v62  ;;  %v3407_v38 = vand.u32 4294901760, %v137_v7  ;;  %v256_v39 = vsub.f32 %v3358_v51, %v5311_v2  ;;  %v125_v62 = vld [vmem:[#allocation5 + $0x148] sm:$0xff] }
  0x28   :  { %175 = vmatpush.msra.mxu0 %v3313_v28  ;;  %5435 = vst [vmem:[#allocation20_spill] sm:$0xff] %v3399_v30  ;;  %323 = vmatpush.msra.mxu2 %v3329_v34  ;;  %v3414_v43 = vsub.f32 %v92_v55, %v3383_v1  ;;  %v3416_v44 = vand.u32 4294901760, %v84_v13  ;;  %v5314_v45 = vand.u32 4294901760, %v3381_v0  ;;  %v251_v49 = vand.u32 4294901760, %v250_v12 }
  0x29   :  { %228 = vmatpush.msra.mxu1 %v227_v57  ;;  %371 = vmatpush.msra.mxu3 %v3313_v28  ;;  %v3422_v50 = vsub.f32 %v141_v60, %v3393_v18  ;;  %v3424_v53 = vand.u32 4294901760, %v133_v36  ;;  %v262_v55 = vsub.f32 %v3370_v58, %v5310_v31  ;;  %v3431_v56 = vsub.f32 %v88_v63, %v3399_v30 }
  0x2a   :  { %177 = vmatpush.msra.mxu0 %v3337_v40  ;;  %5436 = vst [vmem:[#allocation21_spill] sm:$0xff] %v3416_v44  ;;  %326 = vmatpush.msra.mxu2 %v3341_v41  ;;  %v5317_v57 = vand.u32 4294901760, %v3403_v32  ;;  %v3438_v60 = vsub.f32 %v137_v7, %v3407_v38  ;;  %v257_v12 = vand.u32 4294901760, %v256_v39  ;;  %v268_v63 = vsub.f32 %v3381_v0, %v5314_v45 }
  0x2b   :  { %234 = vmatpush.msra.mxu1 %v233_v61  ;;  %373 = vmatpush.msra.mxu3 %v3337_v40  ;;  %5437 = vst [vmem:[#allocation22_spill] sm:$0xff] %v3422_v50  ;;  %v5318_v61 = vand.u32 4294901760, %v3397_v29  ;;  %v3447_v31 = vsub.f32 %v84_v13, %v3416_v44  ;;  %v5323_v2 = vand.u32 4294901760, %v3414_v43  ;;  %v5325_v7 = vand.u32 4294901760, %v3422_v50 }
  0x2c   :  { %179 = vmatpush.msra.mxu0 %v3348_v46  ;;  %329 = vmatpush.msra.mxu2 %v3358_v51  ;;  %5438 = vst [vmem:[#allocation23_spill] sm:$0xff] %v3438_v60  ;;  %v3454_v48 = vsub.f32 %v133_v36, %v3424_v53  ;;  %v263_v39 = vand.u32 4294901760, %v262_v55  ;;  %v543_v13 = vsub.f32 %v3403_v32, %v5317_v57  ;;  %v5326_v42 = vand.u32 4294901760, %v3431_v56 }
  0x2d   :  { %240 = vmatpush.msra.mxu1 %v239_v8  ;;  %375 = vmatpush.msra.mxu3 %v3348_v46  ;;  %v3440_v8 = vand.u32 4294901760, %v129_v47  ;;  %v274_v45 = vsub.f32 %v3397_v29, %v5318_v61  ;;  %v5329_v36 = vand.u32 4294901760, %v3438_v60  ;;  %v3472_v55 = vand.u32 4294901760, %v121_v54 }
  0x2e   :  { %181 = vmatpush.msra.mxu0 %v3360_v52  ;;  %332 = vmatpush.msra.mxu2 %v3370_v58  ;;  %v269_v57 = vand.u32 4294901760, %v268_v63  ;;  %v280_v61 = vsub.f32 %v3414_v43, %v5323_v2  ;;  %v3488_v63 = vand.u32 4294901760, %v117_v35  ;;  %v544_v2 = vand.u32 4294901760, %v543_v13 }
  0x2f   :  { %246 = vmatpush.msra.mxu1 %v245_v37  ;;  %377 = vmatpush.msra.mxu3 %v3360_v52  ;;  %v3456_v37 = vand.u32 4294901760, %v125_v62  ;;  %v275_v23 = vand.u32 4294901760, %v274_v45  ;;  %v286_v33 = vsub.f32 %v3431_v56, %v5326_v42  ;;  %v3501_v25 = vsub.f32 %v121_v54, %v3472_v55  ;;  %v105_v45 = vld [vmem:[#allocation5 + $0xa8] sm:$0xff] }
  0x30   :  { %183 = vmatpush.msra.mxu0 %v3372_v59  ;;  %335 = vmatpush.msra.mxu2 %v3381_v0  ;;  %v281_v13 = vand.u32 4294901760, %v280_v61  ;;  %v5439_v42 = vand.u32 4294901760, %v3447_v31  ;;  %v5440_v54 = vand.u32 4294901760, %v3454_v48  ;;  %v5441_v61 = vand.u32 4294901760, %v3282_v14 }
  0x31   :  { %252 = vmatpush.msra.mxu1 %v251_v49  ;;  %379 = vmatpush.msra.mxu3 %v3372_v59  ;;  %v3470_v49 = vsub.f32 %v129_v47, %v3440_v8  ;;  %v549_v47 = vsub.f32 %v3422_v50, %v5325_v7  ;;  %v3522_v50 = vand.u32 4294901760, %v105_v45  ;;  %v101_v59 = vld [vmem:[#allocation5 + $0x88] sm:$0xff]  ;;  %v5443_v14 = vand.u32 4294901760, %v3285_v15 }
  0x32   :  { %185 = vmatpush.msra.mxu0 %v3383_v1  ;;  %338 = vmatpush.msra.mxu2 %v3397_v29  ;;  %v561_v7 = vsub.f32 %v3454_v48, %v5440_v54  ;;  %v5445_v15 = vand.u32 4294901760, %v3288_v16  ;;  %v5447_v16 = vand.u32 4294901760, %v3293_v19  ;;  %v5448_v19 = vand.u32 4294901760, %v3296_v20  ;;  %v83_v20 = vld [vmem:[#allocation2] sm:$0xff] }
  0x33   :  { %258 = vmatpush.msra.mxu1 %v257_v12  ;;  %381 = vmatpush.msra.mxu3 %v3383_v1  ;;  %v3486_v12 = vsub.f32 %v125_v62, %v3456_v37  ;;  %v555_v62 = vsub.f32 %v3438_v60, %v5329_v36  ;;  %v3509_v1 = vand.u32 4294901760, %v109_v24  ;;  %v550_v36 = vand.u32 4294901760, %v549_v47 }
  0x34   :  { %187 = vmatpush.msra.mxu0 %v3399_v30  ;;  %341 = vmatpush.msra.mxu2 %v3414_v43  ;;  %v3542_v60 = vand.u32 4294901760, %v101_v59 }
  0x35   :  { %264 = vmatpush.msra.mxu1 %v263_v39  ;;  %383 = vmatpush.msra.mxu3 %v3399_v30  ;;  %v3503_v39 = vand.u32 4294901760, %v113_v26  ;;  %v292_v30 = vsub.f32 %v3447_v31, %v5439_v42  ;;  %v287_v42 = vand.u32 4294901760, %v286_v33  ;;  %v556_v47 = vand.u32 4294901760, %v555_v62 }
  0x36   :  { %189 = vmatpush.msra.mxu0 %v3416_v44  ;;  %344 = vmatpush.msra.mxu2 %v3431_v56  ;;  %v562_v62 = vand.u32 4294901760, %v561_v7 }
  0x37   :  { %270 = vmatpush.msra.mxu1 %v269_v57  ;;  %385 = vmatpush.msra.mxu3 %v3416_v44  ;;  %v3518_v57 = vsub.f32 %v117_v35, %v3488_v63  ;;  %v5442_v44 = vand.u32 4294901760, %v3470_v49  ;;  %v3530_v35 = vsub.f32 %v113_v26, %v3503_v39  ;;  %v293_v33 = vand.u32 4294901760, %v292_v30  ;;  %v93_v30 = vld [vmem:[#allocation5 + $0x48] sm:$0xff] }
  0x38   :  { %396 = vmatpush.msrb.mxu0 %v5441_v61  ;;  %347 = vmatpush.msra.mxu2 %v3447_v31 }
  0x39   :  { %545 = vmatpush.msrb.mxu3 %v544_v2  ;;  %276 = vmatpush.msra.mxu1 %v275_v23  ;;  %v567_v54 = vsub.f32 %v3470_v49, %v5442_v44  ;;  %v3536_v23 = vsub.f32 %v109_v24, %v3509_v1  ;;  %v97_v2 = vld [vmem:[#allocation5 + $0x68] sm:$0xff]  ;;  %v5444_v44 = vand.u32 4294901760, %v3486_v12  ;;  %v5337_v26 = vand.u32 4294901760, %v3518_v57 }
  0x3a   :  { %400 = vmatpush.msrb.mxu0 %v5443_v14  ;;  %500 = vmatpush.msrb.mxu2 %v3386_v6  ;;  %v3548_v24 = vsub.f32 %v105_v45, %v3522_v50  ;;  %v5336_v14 = vand.u32 4294901760, %v3530_v35  ;;  %v85_v45 = vld [vmem:[#allocation5 + $0x8] sm:$0xff] }
  0x3b   :  { %551 = vmatpush.msrb.mxu3 %v550_v36  ;;  %282 = vmatpush.msra.mxu1 %v281_v13  ;;  %v573_v61 = vsub.f32 %v3486_v12, %v5444_v44  ;;  %v568_v7 = vand.u32 4294901760, %v567_v54  ;;  %v5446_v36 = vand.u32 4294901760, %v3501_v25  ;;  %v3554_v44 = vand.u32 4294901760, %v97_v2 }
  0x3c   :  { %404 = vmatpush.msrb.mxu0 %v5445_v15  ;;  %502 = vmatpush.msrb.mxu2 %v3393_v18  ;;  %v89_v15 = vld [vmem:[#allocation5 + $0x28] sm:$0xff]  ;;  %v3564_v54 = vsub.f32 %v101_v59, %v3542_v60 }
  0x3d   :  { %557 = vmatpush.msrb.mxu3 %v556_v47  ;;  %288 = vmatpush.msra.mxu1 %v287_v42  ;;  %v579_v13 = vsub.f32 %v3501_v25, %v5446_v36  ;;  %v574_v42 = vand.u32 4294901760, %v573_v61  ;;  %v585_v47 = vsub.f32 %v3518_v57, %v5337_v26  ;;  %v3566_v36 = vand.u32 4294901760, %v93_v30 }
  0x3e   :  { %408 = vmatpush.msrb.mxu0 %v5447_v16  ;;  %504 = vmatpush.msrb.mxu2 %v3407_v38  ;;  %v602_v16 = vand.u32 4294901760, %v3548_v24  ;;  %v3577_v59 = vsub.f32 %v97_v2, %v3554_v44  ;;  %v3579_v61 = vand.u32 4294901760, %v89_v15  ;;  %v3592_v26 = vand.u32 4294901760, %v85_v45 }
  0x3f   :  { %563 = vmatpush.msrb.mxu3 %v562_v62  ;;  %294 = vmatpush.msra.mxu1 %v293_v33  ;;  %v580_v33 = vand.u32 4294901760, %v579_v13  ;;  %v591_v62 = vsub.f32 %v3530_v35, %v5336_v14  ;;  %v586_v13 = vand.u32 4294901760, %v585_v47  ;;  %v608_v14 = vand.u32 4294901760, %v3564_v54 }
  0x40   :  { %412 = vmatpush.msrb.mxu0 %v5448_v19  ;;  %506 = vmatpush.msrb.mxu2 %v3424_v53  ;;  %v5449_v19 = vand.u32 4294901760, %v3299_v21  ;;  %v3590_v2 = vsub.f32 %v93_v30, %v3566_v36  ;;  %v5451_v21 = vand.u32 4294901760, %v3311_v27  ;;  %v614_v30 = vand.u32 4294901760, %v3577_v59 }
  0x41   :  { %463 = vmatpush.msrb.mxu1 %v3267_v3  ;;  %569 = vmatpush.msrb.mxu3 %v568_v7  ;;  %v5450_v3 = vand.u32 4294901760, %v3536_v23  ;;  %v3605_v47 = vsub.f32 %v89_v15, %v3579_v61  ;;  %v5453_v27 = vand.u32 4294901760, %v3329_v34  ;;  %v5454_v15 = vand.u32 4294901760, %v3341_v41 }
  0x42   :  { %416 = vmatpush.msrb.mxu0 %v5449_v19  ;;  %508 = vmatpush.msrb.mxu2 %v3440_v8  ;;  %v592_v19 = vand.u32 4294901760, %v591_v62  ;;  %v620_v62 = vand.u32 4294901760, %v3590_v2 }
  0x43   :  { %465 = vmatpush.msrb.mxu1 %v3269_v4  ;;  %v597_v7 = vsub.f32 %v3536_v23, %v5450_v3  ;;  %575 = vmatpush.msrb.mxu3 %v574_v42  ;;  %v3597_v4 = vand.u32 4294901760, %v83_v20  ;;  %v603_v42 = vsub.f32 %v3548_v24, %v602_v16  ;;  %v3616_v3 = vsub.f32 %v85_v45, %v3592_v26 }
  0x44   :  { %420 = vmatpush.msrb.mxu0 %v5451_v21  ;;  %510 = vmatpush.msrb.mxu2 %v3456_v37  ;;  %v5455_v45 = vand.u32 4294901760, %v3358_v51  ;;  %v621_v41 = vsub.f32 %v3590_v2, %v620_v62  ;;  %v5456_v21 = vand.u32 4294901760, %v3370_v58 }
  0x45   :  { %467 = vmatpush.msrb.mxu1 %v3271_v5  ;;  %5452 = vst [vmem:[#allocation24_spill] sm:$0xff] %v3597_v4  ;;  %581 = vmatpush.msrb.mxu3 %v580_v33  ;;  %v598_v5 = vand.u32 4294901760, %v597_v7  ;;  %v609_v33 = vsub.f32 %v3564_v54, %v608_v14  ;;  %v604_v34 = vand.u32 4294901760, %v603_v42  ;;  %v615_v7 = vsub.f32 %v3577_v59, %v614_v30 }
  0x46   :  { %424 = vmatpush.msrb.mxu0 %v5453_v27  ;;  %512 = vmatpush.msrb.mxu2 %v3472_v55  ;;  %v5458_v42 = vand.u32 4294901760, %v3381_v0  ;;  %v5459_v27 = vand.u32 4294901760, %v3397_v29  ;;  %v5460_v0 = vand.u32 4294901760, %v3414_v43  ;;  %v5461_v29 = vand.u32 4294901760, %v3431_v56  ;;  %v5467_v43 = vld [vmem:[#allocation23_spill] sm:$0xff] }
  0x47   :  { %469 = vmatpush.msrb.mxu1 %v3273_v9  ;;  %587 = vmatpush.msrb.mxu3 %v586_v13  ;;  %v3622_v9 = vsub.f32 %v83_v20, %v3597_v4  ;;  %v626_v13 = vand.u32 4294901760, %v3605_v47  ;;  %v632_v20 = vand.u32 4294901760, %v3616_v3 }
  0x48   :  { %428 = vmatpush.msrb.mxu0 %v5454_v15  ;;  %514 = vmatpush.msrb.mxu2 %v3488_v63  ;;  %v5462_v15 = vand.u32 4294901760, %v3447_v31  ;;  %v5466_v31 = vld [vmem:[#allocation19_spill] sm:$0xff] }
  0x49   :  { %471 = vmatpush.msrb.mxu1 %v3275_v10  ;;  %593 = vmatpush.msrb.mxu3 %v592_v19  ;;  %v610_v10 = vand.u32 4294901760, %v609_v33  ;;  %v3641_v51 = vand.u32 4294901760, %v3622_v9  ;;  %v627_v19 = vsub.f32 %v3605_v47, %v626_v13  ;;  %v633_v58 = vsub.f32 %v3616_v3, %v632_v20 }
  0x4a   :  { %432 = vmatpush.msrb.mxu0 %v5455_v45  ;;  %516 = vmatpush.msrb.mxu2 %v3503_v39  ;;  %v5472_v45 = vand.u32 4294901760, %v3454_v48 }
  0x4b   :  { %473 = vmatpush.msrb.mxu1 %v3277_v11  ;;  %599 = vmatpush.msrb.mxu3 %v598_v5  ;;  %5457 = vst [vmem:[#allocation25_spill] sm:$0xff] %v3641_v51  ;;  %v616_v11 = vand.u32 4294901760, %v615_v7  ;;  %v193_v5 = vsub.f32 %v3622_v9, %v3641_v51  ;;  %v634_v33 = vand.u32 4294901760, %v633_v58  ;;  %v5471_v7 = vld [vmem:[#allocation21_spill] sm:$0xff] }
  0x4c   :  { %436 = vmatpush.msrb.mxu0 %v5456_v21  ;;  %518 = vmatpush.msrb.mxu2 %v3509_v1 }
  0x4d   :  { %475 = vmatpush.msrb.mxu1 %v3290_v17  ;;  %605 = vmatpush.msrb.mxu3 %v604_v34  ;;  %v622_v17 = vand.u32 4294901760, %v621_v41  ;;  %v5469_v34 = vld [vmem:[#allocation20_spill] sm:$0xff] }
  0x4e   :  { %440 = vmatpush.msrb.mxu0 %v5458_v42  ;;  %520 = vmatpush.msrb.mxu2 %v3522_v50 }
  0x4f   :  { %477 = vmatpush.msrb.mxu1 %v3301_v22  ;;  %611 = vmatpush.msrb.mxu3 %v610_v10  ;;  %v628_v22 = vand.u32 4294901760, %v627_v19  ;;  %v5473_v10 = vand.u32 4294901760, %v3470_v49  ;;  %v110_v19 = vld [vmem:[#allocation5 + $0xd0] sm:$0xff] }
  0x50   :  { %444 = vmatpush.msrb.mxu0 %v5459_v27  ;;  %522 = vmatpush.msrb.mxu2 %v3542_v60  ;;  %v106_v27 = vld [vmem:[#allocation5 + $0xb0] sm:$0xff] }
  0x51   :  { %479 = vmatpush.msrb.mxu1 %v3313_v28  ;;  %617 = vmatpush.msrb.mxu3 %v616_v11  ;;  %v3667_v28 = vand.u32 4294901760, %v193_v5 }
  0x52   :  { %448 = vmatpush.msrb.mxu0 %v5460_v0  ;;  %524 = vmatpush.msrb.mxu2 %v3554_v44  ;;  %v3839_v0 = vand.u32 4294901760, %v110_v19 }
  0x53   :  { %481 = vmatpush.msrb.mxu1 %v3337_v40  ;;  %623 = vmatpush.msrb.mxu3 %v622_v17  ;;  %v5463_v40 = vld [vmem:[#allocation18_spill] sm:$0xff] }
  0x54   :  { %452 = vmatpush.msrb.mxu0 %v5461_v29  ;;  %526 = vmatpush.msrb.mxu2 %v3566_v36  ;;  %v102_v29 = vld [vmem:[#allocation5 + $0x90] sm:$0xff] }
  0x55   :  { %483 = vmatpush.msrb.mxu1 %v3348_v46  ;;  %629 = vmatpush.msrb.mxu3 %v628_v22  ;;  %v5464_v46 = vld [vmem:[#allocation22_spill] sm:$0xff] }
  0x56   :  { %456 = vmatpush.msrb.mxu0 %v5462_v15  ;;  %528 = vmatpush.msrb.mxu2 %v3579_v61  ;;  %v5468_v56 = vand.u32 4294901760, %v5464_v46 }
  0x57   :  { %485 = vmatpush.msrb.mxu1 %v3360_v52  ;;  %635 = vmatpush.msrb.mxu3 %v634_v33  ;;  %v5465_v52 = vand.u32 4294901760, %v3403_v32 }
  0x58   :  { %195 = vmatmul.f32.vlgmr.msra.gmra.mxu0 %v3667_v28  ;;  %350 = vmatmul.f32.vlgmr.msra.gmra.mxu2 %v3622_v9 }
  0x59   :  { %389 = vmatmul.f32.vlgmr.msra.gmra.mxu3 %v3641_v51  ;;  %643 = vmatpush.msra.mxu0 %v3403_v32  ;;  %v5470_v32 = vand.u32 4294901760, %v5467_v43 }
  0x5a   :  { %804 = vmatpush.msra.mxu3 %v3386_v6  ;;  %487 = vmatpush.msrb.mxu1 %v5463_v40 }
  0x5b   :  { %530 = vmatpush.msrb.mxu2 %v3592_v26  ;;  %646 = vmatpush.msra.mxu0 %v5464_v46 }
  0x5c   :  { %806 = vmatpush.msra.mxu3 %v3393_v18  ;;  %489 = vmatpush.msrb.mxu1 %v5466_v31 }
  0x5d   :  { %737 = vmatpush.msra.mxu2 %v5465_v52  ;;  %649 = vmatpush.msra.mxu0 %v5467_v43  ;;  %v3852_v52 = vand.u32 4294901760, %v106_v27  ;;  %v147_v43 = vld [vmem:[#allocation5 + $0x1f8] sm:$0xff] }
  0x5e   :  { %296 = vmatmul.f32.vlgmr.msra.gmra.mxu1 %v3597_v4  ;;  %808 = vmatpush.msra.mxu3 %v3407_v38 }
  0x5f   :  { %741 = vmatpush.msra.mxu2 %v5468_v56  ;;  %491 = vmatpush.msrb.mxu1 %v5469_v34 }
  0x60   :  { %652 = vmatpush.msra.mxu0 %v3454_v48  ;;  %810 = vmatpush.msra.mxu3 %v3424_v53  ;;  %v5474_v48 = vand.u32 4294901760, %v3486_v12 }
  0x61   :  { %745 = vmatpush.msra.mxu2 %v5470_v32  ;;  %493 = vmatpush.msrb.mxu1 %v5471_v7  ;;  %v3862_v32 = vsub.f32 %v110_v19, %v3839_v0  ;;  %v3864_v7 = vand.u32 4294901760, %v102_v29 }
  0x62   :  { %655 = vmatpush.msra.mxu0 %v3470_v49  ;;  %812 = vmatpush.msra.mxu3 %v3440_v8  ;;  %v138_v49 = vld [vmem:[#allocation5 + $0x1b0] sm:$0xff] }
  0x63   :  { %696 = vmatpush.msra.mxu1 %v3386_v6  ;;  %749 = vmatpush.msra.mxu2 %v5472_v45  ;;  %v5475_v6 = vand.u32 4294901760, %v3501_v25  ;;  %v98_v45 = vld [vmem:[#allocation5 + $0x70] sm:$0xff] }
  0x64   :  { %458 = vmatmul.f32.vlgmr.msrb.gmra.mxu0 %v3597_v4  ;;  %814 = vmatpush.msra.mxu3 %v3456_v37 }
  0x65   :  { %698 = vmatpush.msra.mxu1 %v3393_v18  ;;  %658 = vmatpush.msra.mxu0 %v3486_v12  ;;  %v5476_v18 = vand.u32 4294901760, %v3518_v57 }
  0x66   :  { %753 = vmatpush.msra.mxu2 %v5473_v10  ;;  %495 = vmatmul.f32.vlgmr.msrb.gmra.mxu1 %v3597_v4 }
  0x67   :  { %661 = vmatpush.msra.mxu0 %v3501_v25  ;;  %700 = vmatpush.msra.mxu1 %v3407_v38  ;;  %v5477_v38 = vand.u32 4294901760, %v3530_v35  ;;  %v146_v25 = vld [vmem:[#allocation5 + $0x1f0] sm:$0xff] }
  0x68   :  { %757 = vmatpush.msra.mxu2 %v5474_v48  ;;  %816 = vmatpush.msra.mxu3 %v3472_v55  ;;  %v143_v48 = vld [vmem:[#allocation5 + $0x1d8] sm:$0xff] }
  0x69   :  { %664 = vmatpush.msra.mxu0 %v3518_v57  ;;  %702 = vmatpush.msra.mxu1 %v3424_v53  ;;  %v5478_v53 = vand.u32 4294901760, %v3536_v23  ;;  %v130_v57 = vld [vmem:[#allocation5 + $0x170] sm:$0xff] }
  0x6a   :  { %761 = vmatpush.msra.mxu2 %v5475_v6  ;;  %818 = vmatpush.msra.mxu3 %v3488_v63 }
  0x6b   :  { %667 = vmatpush.msra.mxu0 %v3530_v35  ;;  %704 = vmatpush.msra.mxu1 %v3440_v8  ;;  %v3736_v8 = vand.u32 4294901760, %v146_v25 }
  0x6c   :  { %765 = vmatpush.msra.mxu2 %v5476_v18  ;;  %820 = vmatpush.msra.mxu3 %v3503_v39  ;;  %v3873_v18 = vsub.f32 %v106_v27, %v3852_v52 }
  0x6d   :  { %670 = vmatpush.msra.mxu0 %v3536_v23  ;;  %706 = vmatpush.msra.mxu1 %v3456_v37  ;;  %v142_v37 = vld [vmem:[#allocation5 + $0x1d0] sm:$0xff]  ;;  %v3751_v12 = vsub.f32 %v146_v25, %v3736_v8 }
  0x6e   :  { %769 = vmatpush.msra.mxu2 %v5477_v38  ;;  %822 = vmatpush.msra.mxu3 %v3509_v1  ;;  %v94_v25 = vld [vmem:[#allocation5 + $0x50] sm:$0xff] }
  0x6f   :  { %673 = vmatpush.msra.mxu0 %v3548_v24  ;;  %708 = vmatpush.msra.mxu1 %v3472_v55  ;;  %v3746_v55 = vand.u32 4294901760, %v142_v37  ;;  %v5349_v23 = vand.u32 4294901760, %v3751_v12  ;;  %v126_v24 = vld [vmem:[#allocation5 + $0x150] sm:$0xff] }
  0x70   :  { %773 = vmatpush.msra.mxu2 %v5478_v53  ;;  %824 = vmatpush.msra.mxu3 %v3522_v50  ;;  %v3876_v53 = vand.u32 4294901760, %v147_v43 }
  0x71   :  { %676 = vmatpush.msra.mxu0 %v3564_v54  ;;  %710 = vmatpush.msra.mxu1 %v3488_v63  ;;  %v134_v63 = vld [vmem:[#allocation5 + $0x190] sm:$0xff] }
  0x72   :  { %777 = vmatpush.msra.mxu2 %v602_v16  ;;  %826 = vmatpush.msra.mxu3 %v3542_v60  ;;  %v3766_v35 = vand.u32 4294901760, %v134_v63  ;;  %v122_v54 = vld [vmem:[#allocation5 + $0x130] sm:$0xff]  ;;  %v3786_v16 = vand.u32 4294901760, %v126_v24  ;;  %v3902_v27 = vsub.f32 %v147_v43, %v3876_v53 }
  0x73   :  { %679 = vmatpush.msra.mxu0 %v3577_v59  ;;  %712 = vmatpush.msra.mxu1 %v3503_v39  ;;  %v3756_v39 = vand.u32 4294901760, %v138_v49 }
  0x74   :  { %781 = vmatpush.msra.mxu2 %v608_v14  ;;  %828 = vmatpush.msra.mxu3 %v3554_v44  ;;  %v3777_v14 = vand.u32 4294901760, %v130_v57  ;;  %5481 = vst [vmem:[#allocation19_spill] sm:$0xff] %v3902_v27 }
  0x75   :  { %682 = vmatpush.msra.mxu0 %v3590_v2  ;;  %714 = vmatpush.msra.mxu1 %v3509_v1  ;;  %v3764_v1 = vsub.f32 %v142_v37, %v3746_v55  ;;  %v118_v2 = vld [vmem:[#allocation5 + $0x110] sm:$0xff] }
  0x76   :  { %785 = vmatpush.msra.mxu2 %v614_v30  ;;  %830 = vmatpush.msra.mxu3 %v3566_v36  ;;  %v884_v30 = vsub.f32 %v3751_v12, %v5349_v23 }
  0x77   :  { %685 = vmatpush.msra.mxu0 %v3605_v47  ;;  %716 = vmatpush.msra.mxu1 %v3522_v50  ;;  %v3775_v50 = vsub.f32 %v138_v49, %v3756_v39  ;;  %v5348_v59 = vand.u32 4294901760, %v3764_v1  ;;  %v3795_v47 = vand.u32 4294901760, %v122_v54  ;;  %v3883_v49 = vand.u32 4294901760, %v98_v45 }
  0x78   :  { %789 = vmatpush.msra.mxu2 %v620_v62  ;;  %832 = vmatpush.msra.mxu3 %v3579_v61  ;;  %v3800_v62 = vsub.f32 %v130_v57, %v3777_v14 }
  0x79   :  { %688 = vmatpush.msra.mxu0 %v3616_v3  ;;  %718 = vmatpush.msra.mxu1 %v3542_v60  ;;  %v3784_v60 = vsub.f32 %v134_v63, %v3766_v35  ;;  %v114_v3 = vld [vmem:[#allocation5 + $0xf0] sm:$0xff]  ;;  %v890_v41 = vsub.f32 %v3764_v1, %v5348_v59  ;;  %v3819_v11 = vsub.f32 %v122_v54, %v3795_v47  ;;  %v139_v63 = vld [vmem:[#allocation5 + $0x1b8] sm:$0xff]  ;;  %v5338_v54 = vand.u32 4294901760, %v3862_v32 }
  0x7a   :  { %793 = vmatpush.msra.mxu2 %v626_v13  ;;  %834 = vmatpush.msra.mxu3 %v3592_v26  ;;  %v5347_v13 = vand.u32 4294901760, %v3775_v50  ;;  %v3826_v17 = vand.u32 4294901760, %v114_v3  ;;  %v5344_v58 = vand.u32 4294901760, %v3800_v62  ;;  %5479 = vst [vmem:[#allocation18_spill] sm:$0xff] %v3883_v49 }
  0x7b   :  { %536 = vmatmul.f32.vlgmr.msrb.gmra.mxu2 %v3667_v28  ;;  %637 = vmatmul.f32.vlgmr.msrb.gmra.mxu3 %v3597_v4  ;;  %v5345_v21 = vand.u32 4294901760, %v3784_v60  ;;  %v891_v5 = vand.u32 4294901760, %v890_v41  ;;  %v3894_v41 = vand.u32 4294901760, %v94_v25  ;;  %v938_v43 = vsub.f32 %v3862_v32, %v5338_v54 }
  0x7c   :  { %841 = vmatpush.msrb.mxu0 %v3736_v8  ;;  %1037 = vmatpush.msrb.mxu3 %v3736_v8  ;;  %v896_v42 = vsub.f32 %v3775_v50, %v5347_v13  ;;  %v908_v40 = vsub.f32 %v3800_v62, %v5344_v58  ;;  %v3850_v46 = vsub.f32 %v114_v3, %v3826_v17 }
  0x7d   :  { %720 = vmatpush.msra.mxu1 %v3554_v44  ;;  %797 = vmatpush.msra.mxu2 %v632_v20  ;;  %v3805_v44 = vand.u32 4294901760, %v118_v2  ;;  %v3813_v20 = vsub.f32 %v126_v24, %v3786_v16  ;;  %v902_v22 = vsub.f32 %v3784_v60, %v5345_v21  ;;  %v3887_v24 = vsub.f32 %v102_v29, %v3864_v7 }
  0x7e   :  { %843 = vmatpush.msrb.mxu0 %v3746_v55  ;;  %1039 = vmatpush.msrb.mxu3 %v3746_v55  ;;  %v897_v15 = vand.u32 4294901760, %v896_v42  ;;  %v909_v6 = vand.u32 4294901760, %v908_v40  ;;  %v5339_v38 = vand.u32 4294901760, %v3850_v46  ;;  %5480 = vst [vmem:[#allocation22_spill] sm:$0xff] %v3894_v41  ;;  %v5342_v42 = vand.u32 4294901760, %v3873_v18 }
  0x7f   :  { %984 = vmatpush.msrb.mxu2 %v3751_v12  ;;  %722 = vmatpush.msra.mxu1 %v3566_v36  ;;  %v885_v36 = vand.u32 4294901760, %v884_v30  ;;  %v5343_v33 = vand.u32 4294901760, %v3813_v20  ;;  %v903_v56 = vand.u32 4294901760, %v902_v22  ;;  %v3890_v30 = vand.u32 4294901760, %v143_v48  ;;  %v135_v22 = vld [vmem:[#allocation5 + $0x198] sm:$0xff] }
  0x80   :  { %845 = vmatpush.msrb.mxu0 %v3756_v39  ;;  %1041 = vmatpush.msrb.mxu3 %v3756_v39  ;;  %v932_v19 = vsub.f32 %v3850_v46, %v5339_v38  ;;  %v944_v54 = vsub.f32 %v3873_v18, %v5342_v42  ;;  %v939_v42 = vand.u32 4294901760, %v938_v43  ;;  %v119_v43 = vld [vmem:[#allocation5 + $0x118] sm:$0xff] }
  0x81   :  { %987 = vmatpush.msrb.mxu2 %v3764_v1  ;;  %724 = vmatpush.msra.mxu1 %v3579_v61  ;;  %v3832_v61 = vsub.f32 %v118_v2, %v3805_v44  ;;  %v914_v34 = vsub.f32 %v3813_v20, %v5343_v33  ;;  %v90_v2 = vld [vmem:[#allocation5 + $0x30] sm:$0xff] }
  0x82   :  { %847 = vmatpush.msrb.mxu0 %v3766_v35  ;;  %1043 = vmatpush.msrb.mxu3 %v3766_v35  ;;  %v3911_v40 = vand.u32 4294901760, %v90_v2 }
  0x83   :  { %990 = vmatpush.msrb.mxu2 %v3775_v50  ;;  %726 = vmatpush.msra.mxu1 %v3592_v26  ;;  %v5341_v26 = vand.u32 4294901760, %v3819_v11  ;;  %v5340_v31 = vand.u32 4294901760, %v3832_v61  ;;  %v915_v57 = vand.u32 4294901760, %v914_v34  ;;  %v5346_v34 = vand.u32 4294901760, %v3887_v24 }
  0x84   :  { %799 = vmatmul.f32.vlgmr.msra.gmra.mxu2 %v3597_v4  ;;  %849 = vmatpush.msrb.mxu0 %v3777_v14  ;;  %5482 = vst [vmem:[#allocation23_spill] sm:$0xff] %v3911_v40 }
  0x85   :  { %886 = vmatpush.msrb.mxu1 %v885_v36  ;;  %993 = vmatpush.msrb.mxu2 %v3784_v60  ;;  %v920_v10 = vsub.f32 %v3819_v11, %v5341_v26  ;;  %v926_v37 = vsub.f32 %v3832_v61, %v5340_v31  ;;  %v86_v36 = vld [vmem:[#allocation5 + $0x10] sm:$0xff]  ;;  %v127_v31 = vld [vmem:[#allocation5 + $0x158] sm:$0xff] }
  0x86   :  { %1045 = vmatpush.msrb.mxu3 %v3777_v14  ;;  %691 = vmatmul.f32.vlgmr.msra.gmra.mxu0 %v3622_v9  ;;  %v123_v26 = vld [vmem:[#allocation5 + $0x138] sm:$0xff] }
  0x87   :  { %836 = vmatmul.f32.vlgmr.msra.gmra.mxu3 %v3597_v4  ;;  %851 = vmatpush.msrb.mxu0 %v3786_v16  ;;  %v921_v3 = vand.u32 4294901760, %v920_v10  ;;  %v927_v29 = vand.u32 4294901760, %v926_v37  ;;  %v3921_v10 = vsub.f32 %v143_v48, %v3890_v30  ;;  %v3928_v37 = vand.u32 4294901760, %v135_v22  ;;  %v115_v4 = vld [vmem:[#allocation5 + $0xf8] sm:$0xff] }
  0x88   :  { %892 = vmatpush.msrb.mxu1 %v891_v5  ;;  %996 = vmatpush.msrb.mxu2 %v3800_v62  ;;  %v3904_v5 = vand.u32 4294901760, %v139_v63  ;;  %v5350_v48 = vand.u32 4294901760, %v3902_v27  ;;  %v3967_v59 = vand.u32 4294901760, %v123_v26 }
  0x89   :  { %1047 = vmatpush.msrb.mxu3 %v3786_v16  ;;  %730 = vmatmul.f32.vlgmr.msra.gmra.mxu1 %v3641_v51  ;;  %5484 = vst [vmem:[#allocation21_spill] sm:$0xff] %v3921_v10  ;;  %v5354_v58 = vand.u32 4294901760, %v3921_v10  ;;  %v3958_v21 = vsub.f32 %v135_v22, %v3928_v37  ;;  %v103_v51 = vld [vmem:[#allocation5 + $0x98] sm:$0xff] }
  0x8a   :  { %853 = vmatpush.msrb.mxu0 %v3795_v47  ;;  %898 = vmatpush.msrb.mxu1 %v897_v15  ;;  %v3909_v15 = vsub.f32 %v98_v45, %v3883_v49  ;;  %v3926_v45 = vsub.f32 %v94_v25, %v3894_v41  ;;  %v3936_v38 = vsub.f32 %v139_v63, %v3904_v5 }
  0x8b   :  { %999 = vmatpush.msrb.mxu2 %v3813_v20  ;;  %1049 = vmatpush.msrb.mxu3 %v3795_v47  ;;  %v3941_v25 = vsub.f32 %v90_v2, %v3911_v40  ;;  %v950_v63 = vsub.f32 %v3887_v24, %v5346_v34  ;;  %5486 = vst [vmem:[#allocation27_spill] sm:$0xff] %v3958_v21  ;;  %v945_v34 = vand.u32 4294901760, %v944_v54  ;;  %v3983_v2 = vand.u32 4294901760, %v119_v43 }
  0x8c   :  { %855 = vmatpush.msrb.mxu0 %v3805_v44  ;;  %904 = vmatpush.msrb.mxu1 %v903_v56  ;;  %v3917_v56 = vand.u32 4294901760, %v86_v36  ;;  %5485 = vst [vmem:[#allocation26_spill] sm:$0xff] %v3936_v38  ;;  %v5488_v13 = vand.u32 4294901760, %v3936_v38 }
  0x8d   :  { %1002 = vmatpush.msrb.mxu2 %v3819_v11  ;;  %1051 = vmatpush.msrb.mxu3 %v3805_v44 }
  0x8e   :  { %857 = vmatpush.msrb.mxu0 %v3826_v17  ;;  %910 = vmatpush.msrb.mxu1 %v909_v6  ;;  %5483 = vst [vmem:[#allocation20_spill] sm:$0xff] %v3917_v56  ;;  %v131_v6 = vld [vmem:[#allocation5 + $0x178] sm:$0xff]  ;;  %v3951_v33 = vsub.f32 %v86_v36, %v3917_v56  ;;  %v1225_v36 = vsub.f32 %v3902_v27, %v5350_v48  ;;  %v5492_v27 = vand.u32 4294901760, %v3751_v12  ;;  %v5494_v12 = vand.u32 4294901760, %v3764_v1 }
  0x8f   :  { %1005 = vmatpush.msrb.mxu2 %v3832_v61  ;;  %1053 = vmatpush.msrb.mxu3 %v3826_v17  ;;  %v1231_v48 = vsub.f32 %v3921_v10, %v5354_v58  ;;  %v1237_v23 = vsub.f32 %v3936_v38, %v5488_v13  ;;  %v3999_v10 = vsub.f32 %v123_v26, %v3967_v59  ;;  %v5496_v1 = vand.u32 4294901760, %v3775_v50 }
  0x90   :  { %859 = vmatpush.msrb.mxu0 %v3839_v0  ;;  %916 = vmatpush.msrb.mxu1 %v915_v57  ;;  %v933_v57 = vand.u32 4294901760, %v932_v19  ;;  %v3944_v19 = vand.u32 4294901760, %v131_v6  ;;  %v1226_v58 = vand.u32 4294901760, %v1225_v36  ;;  %v4007_v36 = vand.u32 4294901760, %v115_v4 }
  0x91   :  { %1008 = vmatpush.msrb.mxu2 %v3850_v46  ;;  %1055 = vmatpush.msrb.mxu3 %v3839_v0  ;;  %v1232_v13 = vand.u32 4294901760, %v1231_v48  ;;  %v5490_v26 = vand.u32 4294901760, %v3951_v33  ;;  %v5498_v50 = vand.u32 4294901760, %v3784_v60  ;;  %v5499_v60 = vand.u32 4294901760, %v3800_v62 }
  0x92   :  { %861 = vmatpush.msrb.mxu0 %v3852_v52  ;;  %922 = vmatpush.msrb.mxu1 %v921_v3  ;;  %v5353_v3 = vand.u32 4294901760, %v3909_v15  ;;  %v3976_v54 = vsub.f32 %v131_v6, %v3944_v19  ;;  %v5487_v6 = vand.u32 4294901760, %v3926_v45  ;;  %v5501_v62 = vand.u32 4294901760, %v3813_v20 }
  0x93   :  { %1011 = vmatpush.msrb.mxu2 %v3862_v32  ;;  %1057 = vmatpush.msrb.mxu3 %v3852_v52  ;;  %v974_v38 = vsub.f32 %v3951_v33, %v5490_v26  ;;  %v4046_v26 = vand.u32 4294901760, %v103_v51  ;;  %v5502_v20 = vand.u32 4294901760, %v3819_v11 }
  0x94   :  { %863 = vmatpush.msrb.mxu0 %v3864_v7  ;;  %928 = vmatpush.msrb.mxu1 %v927_v29  ;;  %v3960_v29 = vand.u32 4294901760, %v127_v31  ;;  %v956_v22 = vsub.f32 %v3909_v15, %v5353_v3  ;;  %v962_v3 = vsub.f32 %v3926_v45, %v5487_v6 }
  0x95   :  { %1014 = vmatpush.msrb.mxu2 %v3873_v18  ;;  %1059 = vmatpush.msrb.mxu3 %v3864_v7 }
  0x96   :  { %865 = vmatpush.msrb.mxu0 %v3883_v49  ;;  %934 = vmatpush.msrb.mxu1 %v933_v57  ;;  %v951_v57 = vand.u32 4294901760, %v950_v63  ;;  %v3992_v63 = vsub.f32 %v127_v31, %v3960_v29  ;;  %v957_v6 = vand.u32 4294901760, %v956_v22  ;;  %v5489_v31 = vand.u32 4294901760, %v3941_v25  ;;  %v107_v22 = vld [vmem:[#allocation5 + $0xb8] sm:$0xff] }
  0x97   :  { %1017 = vmatpush.msrb.mxu2 %v3887_v24  ;;  %1061 = vmatpush.msrb.mxu3 %v3883_v49  ;;  %v4014_v49 = vsub.f32 %v119_v43, %v3983_v2  ;;  %v1238_v43 = vand.u32 4294901760, %v1237_v23  ;;  %v975_v23 = vand.u32 4294901760, %v974_v38  ;;  %v5497_v38 = vand.u32 4294901760, %v3999_v10 }
  0x98   :  { %867 = vmatpush.msrb.mxu0 %v3894_v41  ;;  %940 = vmatpush.msrb.mxu1 %v939_v42  ;;  %v968_v42 = vsub.f32 %v3941_v25, %v5489_v31  ;;  %v963_v31 = vand.u32 4294901760, %v962_v3 }
  0x99   :  { %1020 = vmatpush.msrb.mxu2 %v3909_v15  ;;  %1063 = vmatpush.msrb.mxu3 %v3894_v41  ;;  %v111_v41 = vld [vmem:[#allocation5 + $0xd8] sm:$0xff] }
  0x9a   :  { %869 = vmatpush.msrb.mxu0 %v3911_v40  ;;  %946 = vmatpush.msrb.mxu1 %v945_v34  ;;  %v5491_v34 = vand.u32 4294901760, %v3958_v21  ;;  %v4022_v48 = vand.u32 4294901760, %v111_v41  ;;  %v969_v3 = vand.u32 4294901760, %v968_v42 }
  0x9b   :  { %1023 = vmatpush.msrb.mxu2 %v3926_v45  ;;  %1065 = vmatpush.msrb.mxu3 %v3911_v40 }
  0x9c   :  { %871 = vmatpush.msrb.mxu0 %v3917_v56  ;;  %952 = vmatpush.msrb.mxu1 %v951_v57  ;;  %v1243_v40 = vsub.f32 %v3958_v21, %v5491_v34  ;;  %v4032_v57 = vsub.f32 %v115_v4, %v4007_v36  ;;  %v4034_v21 = vand.u32 4294901760, %v107_v22  ;;  %v4044_v4 = vsub.f32 %v111_v41, %v4022_v48 }
  0x9d   :  { %1026 = vmatpush.msrb.mxu2 %v3941_v25  ;;  %1067 = vmatpush.msrb.mxu3 %v3917_v56  ;;  %v5493_v56 = vand.u32 4294901760, %v3976_v54 }
  0x9e   :  { %1078 = vmatpush.msra.mxu0 %v5492_v27  ;;  %958 = vmatpush.msrb.mxu1 %v957_v6  ;;  %v99_v27 = vld [vmem:[#allocation5 + $0x78] sm:$0xff]  ;;  %v1244_v42 = vand.u32 4294901760, %v1243_v40  ;;  %v5495_v6 = vand.u32 4294901760, %v3992_v63  ;;  %v4056_v41 = vsub.f32 %v107_v22, %v4034_v21  ;;  %v4068_v22 = vsub.f32 %v103_v51, %v4046_v26 }
  0x9f   :  { %1227 = vmatpush.msra.mxu3 %v1226_v58  ;;  %1029 = vmatpush.msrb.mxu2 %v3951_v33  ;;  %v1249_v34 = vsub.f32 %v3976_v54, %v5493_v56  ;;  %v5369_v58 = vand.u32 4294901760, %v4014_v49 }
  0xa0   :  { %1082 = vmatpush.msra.mxu0 %v5494_v12  ;;  %964 = vmatpush.msrb.mxu1 %v963_v31  ;;  %v1255_v56 = vsub.f32 %v3992_v63, %v5495_v6  ;;  %v95_v31 = vld [vmem:[#allocation5 + $0x58] sm:$0xff]  ;;  %v4058_v6 = vand.u32 4294901760, %v99_v27 }
  0xa1   :  { %1182 = vmatpush.msra.mxu2 %v3876_v53  ;;  %1233 = vmatpush.msra.mxu3 %v1232_v13  ;;  %v1261_v13 = vsub.f32 %v3999_v10, %v5497_v38  ;;  %v1250_v40 = vand.u32 4294901760, %v1249_v34  ;;  %v91_v38 = vld [vmem:[#allocation5 + $0x38] sm:$0xff]  ;;  %v4070_v34 = vand.u32 4294901760, %v95_v31 }
  0xa2   :  { %1086 = vmatpush.msra.mxu0 %v5496_v1  ;;  %970 = vmatpush.msrb.mxu1 %v969_v3  ;;  %v1267_v1 = vsub.f32 %v4014_v49, %v5369_v58  ;;  %v1278_v3 = vand.u32 4294901760, %v4044_v4  ;;  %v87_v12 = vld [vmem:[#allocation5 + $0x18] sm:$0xff]  ;;  %v4081_v51 = vsub.f32 %v99_v27, %v4058_v6  ;;  %v4083_v58 = vand.u32 4294901760, %v91_v38 }
  0xa3   :  { %1184 = vmatpush.msra.mxu2 %v3890_v30  ;;  %1239 = vmatpush.msra.mxu3 %v1238_v43  ;;  %v1256_v43 = vand.u32 4294901760, %v1255_v56  ;;  %v1284_v56 = vand.u32 4294901760, %v4056_v41  ;;  %v4094_v27 = vsub.f32 %v95_v31, %v4070_v34 }
  0xa4   :  { %1090 = vmatpush.msra.mxu0 %v5498_v50  ;;  %976 = vmatpush.msrb.mxu1 %v975_v23  ;;  %v1262_v50 = vand.u32 4294901760, %v1261_v13  ;;  %v5500_v23 = vand.u32 4294901760, %v4032_v57  ;;  %v1279_v13 = vsub.f32 %v4044_v4, %v1278_v3  ;;  %v4107_v31 = vsub.f32 %v91_v38, %v4083_v58 }
  0xa5   :  { %1186 = vmatpush.msra.mxu2 %v3904_v5  ;;  %1245 = vmatpush.msra.mxu3 %v1244_v42  ;;  %v5504_v38 = vand.u32 4294901760, %v3850_v46 }
  0xa6   :  { %1094 = vmatpush.msra.mxu0 %v5499_v60  ;;  %1145 = vmatpush.msra.mxu1 %v3736_v8  ;;  %v1273_v42 = vsub.f32 %v4032_v57, %v5500_v23  ;;  %v1268_v8 = vand.u32 4294901760, %v1267_v1  ;;  %v4096_v60 = vand.u32 4294901760, %v87_v12  ;;  %v1285_v1 = vsub.f32 %v4056_v41, %v1284_v56 }
  0xa7   :  { %1188 = vmatpush.msra.mxu2 %v3928_v37  ;;  %1251 = vmatpush.msra.mxu3 %v1250_v40  ;;  %v1290_v40 = vand.u32 4294901760, %v4068_v22  ;;  %v5503_v23 = vand.u32 4294901760, %v3832_v61 }
  0xa8   :  { %1098 = vmatpush.msra.mxu0 %v5501_v62  ;;  %1147 = vmatpush.msra.mxu1 %v3746_v55  ;;  %v1274_v55 = vand.u32 4294901760, %v1273_v42  ;;  %v4118_v42 = vsub.f32 %v87_v12, %v4096_v60  ;;  %v1308_v62 = vand.u32 4294901760, %v4107_v31 }
  0xa9   :  { %1190 = vmatpush.msra.mxu2 %v3944_v19  ;;  %1257 = vmatpush.msra.mxu3 %v1256_v43  ;;  %v1296_v43 = vand.u32 4294901760, %v4081_v51  ;;  %v1291_v11 = vsub.f32 %v4068_v22, %v1290_v40 }
  0xaa   :  { %1102 = vmatpush.msra.mxu0 %v5502_v20  ;;  %1149 = vmatpush.msra.mxu1 %v3756_v39  ;;  %v1280_v39 = vand.u32 4294901760, %v1279_v13  ;;  %v1314_v12 = vand.u32 4294901760, %v4118_v42  ;;  %v5506_v13 = vand.u32 4294901760, %v3873_v18  ;;  %v5507_v20 = vand.u32 4294901760, %v3887_v24 }
  0xab   :  { %1192 = vmatpush.msra.mxu2 %v3960_v29  ;;  %1263 = vmatpush.msra.mxu3 %v1262_v50  ;;  %v1302_v50 = vand.u32 4294901760, %v4094_v27  ;;  %v1297_v61 = vsub.f32 %v4081_v51, %v1296_v43  ;;  %v1292_v46 = vand.u32 4294901760, %v1291_v11 }
  0xac   :  { %1106 = vmatpush.msra.mxu0 %v5503_v23  ;;  %1151 = vmatpush.msra.mxu1 %v3766_v35  ;;  %v1286_v35 = vand.u32 4294901760, %v1285_v1  ;;  %v5509_v1 = vand.u32 4294901760, %v3926_v45  ;;  %v5510_v23 = vand.u32 4294901760, %v3941_v25  ;;  %v5517_v45 = vld [vmem:[#allocation22_spill] sm:$0xff] }
  0xad   :  { %1194 = vmatpush.msra.mxu2 %v3967_v59  ;;  %1269 = vmatpush.msra.mxu3 %v1268_v8  ;;  %v5505_v8 = vand.u32 4294901760, %v3862_v32  ;;  %v1298_v32 = vand.u32 4294901760, %v1297_v61  ;;  %v5518_v25 = vld [vmem:[#allocation26_spill] sm:$0xff] }
  0xae   :  { %1110 = vmatpush.msra.mxu0 %v5504_v38  ;;  %1153 = vmatpush.msra.mxu1 %v3777_v14  ;;  %v1303_v14 = vsub.f32 %v4094_v27, %v1302_v50  ;;  %v5521_v38 = vld [vmem:[#allocation23_spill] sm:$0xff]  ;;  %v5523_v61 = vand.u32 4294901760, %v5518_v25 }
  0xaf   :  { %1196 = vmatpush.msra.mxu2 %v3983_v2  ;;  %1275 = vmatpush.msra.mxu3 %v1274_v55  ;;  %v5508_v55 = vand.u32 4294901760, %v3909_v15  ;;  %v5513_v15 = vld [vmem:[#allocation19_spill] sm:$0xff] }
  0xb0   :  { %1114 = vmatpush.msra.mxu0 %v5505_v8  ;;  %1155 = vmatpush.msra.mxu1 %v3786_v16  ;;  %v1309_v16 = vsub.f32 %v4107_v31, %v1308_v62  ;;  %v1304_v18 = vand.u32 4294901760, %v1303_v14  ;;  %v5524_v8 = vld [vmem:[#allocation20_spill] sm:$0xff]  ;;  %v5526_v14 = vand.u32 4294901760, %v3976_v54 }
  0xb1   :  { %1198 = vmatpush.msra.mxu2 %v4007_v36  ;;  %1281 = vmatpush.msra.mxu3 %v1280_v39  ;;  %v5519_v39 = vld [vmem:[#allocation24_spill] sm:$0xff] }
  0xb2   :  { %1118 = vmatpush.msra.mxu0 %v5506_v13  ;;  %1157 = vmatpush.msra.mxu1 %v3795_v47  ;;  %v1315_v47 = vsub.f32 %v4118_v42, %v1314_v12  ;;  %v1310_v24 = vand.u32 4294901760, %v1309_v16  ;;  %v1536_v16 = vld [vmem:[#allocation8 + $0x50] sm:$0xff] }
  0xb3   :  { %1200 = vmatpush.msra.mxu2 %v4022_v48  ;;  %1287 = vmatpush.msra.mxu3 %v1286_v35  ;;  %v5522_v35 = vld [vmem:[#allocation27_spill] sm:$0xff] }
  0xb4   :  { %1122 = vmatpush.msra.mxu0 %v5507_v20  ;;  %1159 = vmatpush.msra.mxu1 %v3805_v44  ;;  %v1316_v44 = vand.u32 4294901760, %v1315_v47 }
  0xb5   :  { %1202 = vmatpush.msra.mxu2 %v4034_v21  ;;  %1293 = vmatpush.msra.mxu3 %v1292_v46  ;;  %v5525_v46 = vand.u32 4294901760, %v5522_v35 }
  0xb6   :  { %1126 = vmatpush.msra.mxu0 %v5508_v55  ;;  %1161 = vmatpush.msra.mxu1 %v3826_v17  ;;  %v5511_v17 = vand.u32 4294901760, %v3951_v33  ;;  %v5515_v33 = vld [vmem:[#allocation21_spill] sm:$0xff] }
  0xb7   :  { %1204 = vmatpush.msra.mxu2 %v4046_v26  ;;  %1299 = vmatpush.msra.mxu3 %v1298_v32  ;;  %v5520_v11 = vand.u32 4294901760, %v5515_v33 }
  0xb8   :  { %1130 = vmatpush.msra.mxu0 %v5509_v1  ;;  %1163 = vmatpush.msra.mxu1 %v3839_v0  ;;  %v5512_v0 = vld [vmem:[#allocation25_spill] sm:$0xff] }
  0xb9   :  { %1206 = vmatpush.msra.mxu2 %v4058_v6  ;;  %1305 = vmatpush.msra.mxu3 %v1304_v18  ;;  %v1534_v18 = vld [vmem:[#allocation8 + $0x40] sm:$0xff] }
  0xba   :  { %1134 = vmatpush.msra.mxu0 %v5510_v23  ;;  %1165 = vmatpush.msra.mxu1 %v3852_v52  ;;  %v5514_v52 = vld [vmem:[#allocation18_spill] sm:$0xff] }
  0xbb   :  { %1208 = vmatpush.msra.mxu2 %v4070_v34  ;;  %1311 = vmatpush.msra.mxu3 %v1310_v24 }
  0xbc   :  { %1138 = vmatpush.msra.mxu0 %v5511_v17  ;;  %1167 = vmatpush.msra.mxu1 %v3864_v7  ;;  %v5516_v7 = vand.u32 4294901760, %v5513_v15 }
  0xbd   :  { %1210 = vmatpush.msra.mxu2 %v4083_v58  ;;  %1317 = vmatpush.msra.mxu3 %v1316_v44 }
  0xbe   :  { %877 = vmatmul.f32.vlgmr.msrb.gmra.mxu0 %v3667_v28  ;;  %1032 = vmatmul.f32.vlgmr.msrb.gmra.mxu2 %v3622_v9 }
  0xbf   :  { %1071 = vmatmul.f32.vlgmr.msrb.gmra.mxu3 %v5512_v0  ;;  %1325 = vmatpush.msrb.mxu0 %v5513_v15 }
  0xc0   :  { %1486 = vmatpush.msrb.mxu3 %v3876_v53  ;;  %1169 = vmatpush.msra.mxu1 %v5514_v52 }
  0xc1   :  { %1212 = vmatpush.msra.mxu2 %v4096_v60  ;;  %1328 = vmatpush.msrb.mxu0 %v5515_v33 }
  0xc2   :  { %1488 = vmatpush.msrb.mxu3 %v3890_v30  ;;  %1171 = vmatpush.msra.mxu1 %v5517_v45 }
  0xc3   :  { %1419 = vmatpush.msrb.mxu2 %v5516_v7  ;;  %1331 = vmatpush.msrb.mxu0 %v5518_v25  ;;  %v1532_v7 = vld [vmem:[#allocation8 + $0x30] sm:$0xff] }
  0xc4   :  { %978 = vmatmul.f32.vlgmr.msrb.gmra.mxu1 %v5519_v39  ;;  %1490 = vmatpush.msrb.mxu3 %v3904_v5 }
  0xc5   :  { %1423 = vmatpush.msrb.mxu2 %v5520_v11  ;;  %1173 = vmatpush.msra.mxu1 %v5521_v38  ;;  %v1531_v38 = vld [vmem:[#allocation8 + $0x28] sm:$0xff] }
  0xc6   :  { %1334 = vmatpush.msrb.mxu0 %v5522_v35  ;;  %1492 = vmatpush.msrb.mxu3 %v3928_v37 }
  0xc7   :  { %1427 = vmatpush.msrb.mxu2 %v5523_v61  ;;  %1175 = vmatpush.msra.mxu1 %v5524_v8  ;;  %v4336_v8 = vand.u32 4294901760, %v1532_v7 }
  0xc8   :  { %1337 = vmatpush.msrb.mxu0 %v3976_v54  ;;  %1494 = vmatpush.msrb.mxu3 %v3944_v19  ;;  %v4213_v54 = vld [vmem:[#allocation7] sm:$0xf] }
  0xc9   :  { %1378 = vmatpush.msrb.mxu1 %v3876_v53  ;;  %1431 = vmatpush.msrb.mxu2 %v5525_v46  ;;  %v5527_v53 = vand.u32 4294901760, %v3992_v63  ;;  %5529 = vst [vmem:[#allocation25_spill] sm:$0xff] %v4213_v54 }
  0xca   :  { %1140 = vmatmul.f32.vlgmr.msra.gmra.mxu0 %v5519_v39  ;;  %1496 = vmatpush.msrb.mxu3 %v3960_v29 }
  0xcb   :  { %1380 = vmatpush.msrb.mxu1 %v3890_v30  ;;  %1340 = vmatpush.msrb.mxu0 %v3992_v63  ;;  %v5528_v30 = vand.u32 4294901760, %v3999_v10  ;;  %v150_v63 = vperm.slane %v4213_v54, 0 }
  0xcc   :  { %1435 = vmatpush.msrb.mxu2 %v5526_v14  ;;  %1177 = vmatmul.f32.vlgmr.msra.gmra.mxu1 %v5519_v39 }
  0xcd   :  { %1343 = vmatpush.msrb.mxu0 %v3999_v10  ;;  %1382 = vmatpush.msrb.mxu1 %v3904_v5  ;;  %v5530_v5 = vand.u32 4294901760, %v4014_v49  ;;  %v5531_v10 = vand.u32 4294901760, %v4032_v57 }
  0xce   :  { %1439 = vmatpush.msrb.mxu2 %v5527_v53  ;;  %1498 = vmatpush.msrb.mxu3 %v3967_v59 }
  0xcf   :  { %1346 = vmatpush.msrb.mxu0 %v4014_v49  ;;  %1384 = vmatpush.msrb.mxu1 %v3928_v37  ;;  %v1541_v37 = vld [vmem:[#allocation8 + $0x78] sm:$0xff] }
  0xd0   :  { %1443 = vmatpush.msrb.mxu2 %v5528_v30  ;;  %1500 = vmatpush.msrb.mxu3 %v3983_v2 }
  0xd1   :  { %1349 = vmatpush.msrb.mxu0 %v4032_v57  ;;  %1386 = vmatpush.msrb.mxu1 %v3944_v19  ;;  %v1540_v19 = vld [vmem:[#allocation8 + $0x70] sm:$0xff] }
  0xd2   :  { %1447 = vmatpush.msrb.mxu2 %v5530_v5  ;;  %1502 = vmatpush.msrb.mxu3 %v4007_v36  ;;  %v4348_v5 = vand.u32 4294901760, %v1531_v38 }
  0xd3   :  { %1352 = vmatpush.msrb.mxu0 %v4044_v4  ;;  %1388 = vmatpush.msrb.mxu1 %v3960_v29  ;;  %v4231_v29 = vand.u32 4294901760, %v1541_v37  ;;  %v1539_v4 = vld [vmem:[#allocation8 + $0x68] sm:$0xff] }
  0xd4   :  { %1451 = vmatpush.msrb.mxu2 %v5531_v10  ;;  %1504 = vmatpush.msrb.mxu3 %v4022_v48 }
  0xd5   :  { %1355 = vmatpush.msrb.mxu0 %v4056_v41  ;;  %1390 = vmatpush.msrb.mxu1 %v3967_v59  ;;  %v196_v49 = vpop.f32.mrf.mxu0  ;;  %v4238_v59 = vand.u32 4294901760, %v1540_v19 }
  0xd6   :  { %1455 = vmatpush.msrb.mxu2 %v1278_v3  ;;  %1506 = vmatpush.msrb.mxu3 %v4034_v21  ;;  %v197_v57 = vadd.f32 %v196_v49, %v150_v63  ;;  %v1538_v3 = vld [vmem:[#allocation8 + $0x60] sm:$0xff]  ;;  %v1529_v49 = vld [vmem:[#allocation8 + $0x18] sm:$0xff] }
  0xd7   :  { %1358 = vmatpush.msrb.mxu0 %v4068_v22  ;;  %1392 = vmatpush.msrb.mxu1 %v3983_v2  ;;  %v4246_v2 = vsub.f32 %v1541_v37, %v4231_v29 }
  0xd8   :  { %1459 = vmatpush.msrb.mxu2 %v1284_v56  ;;  %1508 = vmatpush.msrb.mxu3 %v4046_v26 }
  0xd9   :  { %1361 = vmatpush.msrb.mxu0 %v4081_v51  ;;  %1394 = vmatpush.msrb.mxu1 %v4007_v36  ;;  %v4251_v36 = vand.u32 4294901760, %v1539_v4  ;;  %v4261_v51 = vand.u32 4294901760, %v1538_v3  ;;  %v5383_v32 = vand.u32 4294901760, %v4246_v2 }
  0xda   :  { %1463 = vmatpush.msrb.mxu2 %v1290_v40  ;;  %1510 = vmatpush.msrb.mxu3 %v4058_v6  ;;  %v1537_v40 = vld [vmem:[#allocation8 + $0x58] sm:$0xff] }
  0xdb   :  { %1364 = vmatpush.msrb.mxu0 %v4094_v27  ;;  %1396 = vmatpush.msrb.mxu1 %v4022_v48  ;;  %v297_v41 = vpop.f32.mrf.mxu1  ;;  %v351_v56 = vpop.f32.mrf.mxu2  ;;  %v4256_v48 = vsub.f32 %v1540_v19, %v4238_v59  ;;  %v4265_v13 = vand.u32 4294901760, %v1537_v40  ;;  %v4272_v27 = vsub.f32 %v1539_v4, %v4251_v36  ;;  %v4280_v20 = vsub.f32 %v1538_v3, %v4261_v51  ;;  %v1557_v19 = vld [vmem:[#allocation8 + $0xf8] sm:$0xff] }
  0xdc   :  { %1467 = vmatpush.msrb.mxu2 %v1296_v43  ;;  %1512 = vmatpush.msrb.mxu3 %v4070_v34  ;;  %v298_v22 = vadd.f32 %v297_v41, %v197_v57 }
  0xdd   :  { %1367 = vmatpush.msrb.mxu0 %v4107_v31  ;;  %1398 = vmatpush.msrb.mxu1 %v4034_v21  ;;  %v390_v21 = vpop.f32.mrf.mxu3  ;;  %v4291_v47 = vsub.f32 %v1537_v40, %v4265_v13  ;;  %v5379_v1 = vand.u32 4294901760, %v4272_v27  ;;  %v5378_v17 = vand.u32 4294901760, %v4280_v20  ;;  %v4374_v40 = vand.u32 4294901760, %v1529_v49 }
  0xde   :  { %1471 = vmatpush.msrb.mxu2 %v1302_v50  ;;  %1514 = vmatpush.msrb.mxu3 %v4083_v58  ;;  %v352_v43 = vadd.f32 %v351_v56, %v298_v22  ;;  %v1535_v50 = vld [vmem:[#allocation8 + $0x48] sm:$0xff]  ;;  %v4372_v22 = vsub.f32 %v1531_v38, %v4348_v5 }
  0xdf   :  { %1370 = vmatpush.msrb.mxu0 %v4118_v42  ;;  %1400 = vmatpush.msrb.mxu1 %v4046_v26  ;;  %v5382_v26 = vand.u32 4294901760, %v4256_v48  ;;  %v4295_v24 = vand.u32 4294901760, %v1535_v50  ;;  %v5377_v33 = vand.u32 4294901760, %v4291_v47  ;;  %v1650_v45 = vsub.f32 %v4272_v27, %v5379_v1  ;;  %5533 = vst [vmem:[#allocation18_spill] sm:$0xff] %v4374_v40 }
  0xe0   :  { %1475 = vmatpush.msrb.mxu2 %v1308_v62  ;;  %1516 = vmatpush.msrb.mxu3 %v4096_v60  ;;  %v391_v31 = vadd.f32 %v390_v21, %v352_v43  ;;  %v4282_v62 = vand.u32 4294901760, %v1536_v16  ;;  %v1656_v61 = vsub.f32 %v4280_v20, %v5378_v17  ;;  %v4376_v43 = vand.u32 4294901760, %v1557_v19  ;;  %v1556_v21 = vld [vmem:[#allocation8 + $0xf0] sm:$0xff] }
  0xe1   :  { %1218 = vmatmul.f32.vlgmr.msra.gmra.mxu2 %v3667_v28  ;;  %1319 = vmatmul.f32.vlgmr.msra.gmra.mxu3 %v5519_v39  ;;  %v1638_v28 = vsub.f32 %v4246_v2, %v5383_v32  ;;  %v459_v55 = vpop.f32.mrf.mxu0  ;;  %v1644_v42 = vsub.f32 %v4256_v48, %v5382_v26  ;;  %v4322_v25 = vsub.f32 %v1535_v50, %v4295_v24  ;;  %v1651_v30 = vand.u32 4294901760, %v1650_v45 }
  0xe2   :  { %1595 = vmatpush.msra.mxu0 %v4231_v29  ;;  %1791 = vmatpush.msra.mxu3 %v4231_v29  ;;  %v460_v44 = vadd.f32 %v459_v55, %v391_v31  ;;  %v4308_v23 = vsub.f32 %v1536_v16, %v4282_v62  ;;  %v1662_v14 = vsub.f32 %v4291_v47, %v5377_v33  ;;  %v1657_v57 = vand.u32 4294901760, %v1656_v61  ;;  %v1554_v61 = vld [vmem:[#allocation8 + $0xe0] sm:$0xff]  ;;  %v1551_v33 = vld [vmem:[#allocation8 + $0xc8] sm:$0xff] }
  0xe3   :  { %1402 = vmatpush.msrb.mxu1 %v4058_v6  ;;  %1479 = vmatpush.msrb.mxu2 %v1314_v12  ;;  %v1533_v6 = vld [vmem:[#allocation8 + $0x38] sm:$0xff]  ;;  %v4303_v12 = vand.u32 4294901760, %v1534_v18  ;;  %v496_v15 = vpop.f32.mrf.mxu1  ;;  %v5374_v10 = vand.u32 4294901760, %v4322_v25  ;;  %v4403_v45 = vsub.f32 %v1557_v19, %v4376_v43 }
  0xe4   :  { %1597 = vmatpush.msra.mxu0 %v4238_v59  ;;  %1793 = vmatpush.msra.mxu3 %v4238_v59  ;;  %v4313_v52 = vand.u32 4294901760, %v1533_v6  ;;  %v4331_v35 = vadd.f32 %v496_v15, %v460_v44  ;;  %v5376_v46 = vand.u32 4294901760, %v4308_v23  ;;  %v1663_v41 = vand.u32 4294901760, %v1662_v14  ;;  %v1555_v44 = vld [vmem:[#allocation8 + $0xe8] sm:$0xff] }
  0xe5   :  { %1738 = vmatpush.msra.mxu2 %v4246_v2  ;;  %1404 = vmatpush.msrb.mxu1 %v4070_v34  ;;  %v1639_v34 = vand.u32 4294901760, %v1638_v28  ;;  %v4327_v11 = vsub.f32 %v1534_v18, %v4303_v12  ;;  %v1674_v56 = vsub.f32 %v4322_v25, %v5374_v10  ;;  %v1528_v18 = vld [vmem:[#allocation8 + $0x10] sm:$0xff]  ;;  %v4399_v15 = vsub.f32 %v1529_v49, %v4374_v40  ;;  %v1526_v49 = vld [vmem:[#allocation8] sm:$0xff] }
  0xe6   :  { %1599 = vmatpush.msra.mxu0 %v4251_v36  ;;  %1795 = vmatpush.msra.mxu3 %v4251_v36  ;;  %v4344_v53 = vsub.f32 %v1533_v6, %v4313_v52  ;;  %v1668_v4 = vsub.f32 %v4308_v23, %v5376_v46  ;;  %v1527_v6 = vld [vmem:[#allocation8 + $0x8] sm:$0xff]  ;;  %5534 = vst [vmem:[#allocation21_spill] sm:$0xff] %v4403_v45  ;;  %v4407_v38 = vand.u32 4294901760, %v1528_v18  ;;  %v4419_v19 = vand.u32 4294901760, %v1555_v44 }
  0xe7   :  { %1741 = vmatpush.msra.mxu2 %v4256_v48  ;;  %1406 = vmatpush.msrb.mxu1 %v4083_v58  ;;  %v1645_v58 = vand.u32 4294901760, %v1644_v42  ;;  %v5373_v63 = vand.u32 4294901760, %v4327_v11  ;;  %v4395_v42 = vand.u32 4294901760, %v1556_v21 }
  0xe8   :  { %1601 = vmatpush.msra.mxu0 %v4261_v51  ;;  %1797 = vmatpush.msra.mxu3 %v4261_v51  ;;  %v5372_v3 = vand.u32 4294901760, %v4344_v53  ;;  %v1669_v31 = vand.u32 4294901760, %v1668_v4  ;;  %5535 = vst [vmem:[#allocation22_spill] sm:$0xff] %v4407_v38 }
  0xe9   :  { %1744 = vmatpush.msra.mxu2 %v4272_v27  ;;  %1408 = vmatpush.msrb.mxu1 %v4096_v60  ;;  %v1530_v60 = vld [vmem:[#allocation8 + $0x20] sm:$0xff] }
  0xea   :  { %1481 = vmatmul.f32.vlgmr.msrb.gmra.mxu2 %v5519_v39  ;;  %1603 = vmatpush.msra.mxu0 %v4265_v13  ;;  %v4353_v37 = vand.u32 4294901760, %v1530_v60  ;;  %v1686_v55 = vsub.f32 %v4344_v53, %v5372_v3 }
  0xeb   :  { %1640 = vmatpush.msra.mxu1 %v1639_v34  ;;  %1747 = vmatpush.msra.mxu2 %v4280_v20  ;;  %v1675_v34 = vand.u32 4294901760, %v1674_v56  ;;  %v5381_v56 = vand.u32 4294901760, %v4399_v15 }
  0xec   :  { %1799 = vmatpush.msra.mxu3 %v4265_v13  ;;  %1373 = vmatmul.f32.vlgmr.msrb.gmra.mxu0 %v3622_v9  ;;  %5532 = vst [vmem:[#allocation19_spill] sm:$0xff] %v4353_v37  ;;  %v1522_v9 = vmax.f32 %v4331_v35, 0.0  ;;  %v4384_v16 = vsub.f32 %v1530_v60, %v4353_v37 }
  0xed   :  { %1518 = vmatmul.f32.vlgmr.msrb.gmra.mxu3 %v5519_v39  ;;  %1605 = vmatpush.msra.mxu0 %v4282_v62  ;;  %v4362_v39 = vsub.f32 %v1532_v7, %v4336_v8  ;;  %v5370_v7 = vand.u32 4294901760, %v4372_v22 }
  0xee   :  { %1646 = vmatpush.msra.mxu1 %v1645_v58  ;;  %1750 = vmatpush.msra.mxu2 %v4291_v47  ;;  %v4386_v50 = vand.u32 4294901760, %v1522_v9  ;;  %v5375_v35 = vand.u32 4294901760, %v4384_v16 }
  0xef   :  { %1801 = vmatpush.msra.mxu3 %v4282_v62  ;;  %1412 = vmatmul.f32.vlgmr.msrb.gmra.mxu1 %v5512_v0  ;;  %v1680_v0 = vsub.f32 %v4327_v11, %v5373_v63  ;;  %v5371_v28 = vand.u32 4294901760, %v4362_v39  ;;  %v1698_v4 = vsub.f32 %v4372_v22, %v5370_v7  ;;  %v4450_v63 = vsub.f32 %v1555_v44, %v4419_v19 }
  0xf0   :  { %1607 = vmatpush.msra.mxu0 %v4295_v24  ;;  %1652 = vmatpush.msra.mxu1 %v1651_v30  ;;  %v4411_v60 = vsub.f32 %v1522_v9, %v4386_v50  ;;  %v4417_v30 = vand.u32 4294901760, %v1527_v6  ;;  %v4424_v9 = vsub.f32 %v1556_v21, %v4395_v42  ;;  %v4437_v21 = vsub.f32 %v1528_v18, %v4407_v38  ;;  %v1552_v18 = vld [vmem:[#allocation8 + $0xd0] sm:$0xff] }
  0xf1   :  { %1753 = vmatpush.msra.mxu2 %v4308_v23  ;;  %1803 = vmatpush.msra.mxu3 %v4295_v24  ;;  %v1681_v58 = vand.u32 4294901760, %v1680_v0  ;;  %v1692_v14 = vsub.f32 %v4362_v39, %v5371_v28  ;;  %v4432_v0 = vand.u32 4294901760, %v1554_v61  ;;  %5539 = vst [vmem:[#allocation27_spill] sm:$0xff] %v4450_v63 }
  0xf2   :  { %1609 = vmatpush.msra.mxu0 %v4303_v12  ;;  %1658 = vmatpush.msra.mxu1 %v1657_v57  ;;  %5536 = vst [vmem:[#allocation26_spill] sm:$0xff] %v4417_v30  ;;  %v1687_v57 = vand.u32 4294901760, %v1686_v55  ;;  %v4439_v55 = vand.u32 4294901760, %v1526_v49  ;;  %v5384_v7 = vand.u32 4294901760, %v4411_v60  ;;  %v4447_v3 = vsub.f32 %v1527_v6, %v4417_v30 }
  0xf3   :  { %1756 = vmatpush.msra.mxu2 %v4322_v25  ;;  %1805 = vmatpush.msra.mxu3 %v4303_v12  ;;  %5537 = vst [vmem:[#allocation24_spill] sm:$0xff] %v4424_v9  ;;  %v1693_v28 = vand.u32 4294901760, %v1692_v14  ;;  %v5389_v10 = vand.u32 4294901760, %v4424_v9  ;;  %v1699_v6 = vand.u32 4294901760, %v1698_v4  ;;  %v4466_v14 = vsub.f32 %v1554_v61, %v4432_v0 }
  0xf4   :  { %1611 = vmatpush.msra.mxu0 %v4313_v52  ;;  %1664 = vmatpush.msra.mxu1 %v1663_v41  ;;  %v5380_v41 = vand.u32 4294901760, %v4403_v45  ;;  %5538 = vst [vmem:[#allocation23_spill] sm:$0xff] %v4439_v55  ;;  %v4471_v1 = vsub.f32 %v1526_v49, %v4439_v55  ;;  %v4474_v4 = vand.u32 4294901760, %v1552_v18  ;;  %v4482_v49 = vand.u32 4294901760, %v1551_v33 }
  0xf5   :  { %1759 = vmatpush.msra.mxu2 %v4327_v11  ;;  %1807 = vmatpush.msra.mxu3 %v4313_v52  ;;  %5540 = vst [vmem:[#allocation20_spill] sm:$0xff] %v4466_v14  ;;  %v5542_v61 = vand.u32 4294901760, %v4450_v63 }
  0xf6   :  { %1613 = vmatpush.msra.mxu0 %v4336_v8  ;;  %1670 = vmatpush.msra.mxu1 %v1669_v31  ;;  %v1553_v31 = vld [vmem:[#allocation8 + $0xd8] sm:$0xff]  ;;  %v1979_v44 = vsub.f32 %v4403_v45, %v5380_v41  ;;  %v1550_v41 = vld [vmem:[#allocation8 + $0xc0] sm:$0xff] }
  0xf7   :  { %1762 = vmatpush.msra.mxu2 %v4344_v53  ;;  %1809 = vmatpush.msra.mxu3 %v4336_v8  ;;  %v4456_v46 = vand.u32 4294901760, %v1553_v31  ;;  %v1549_v45 = vld [vmem:[#allocation8 + $0xb8] sm:$0xff] }
  0xf8   :  { %1615 = vmatpush.msra.mxu0 %v4348_v5  ;;  %1676 = vmatpush.msra.mxu1 %v1675_v34  ;;  %v1704_v34 = vsub.f32 %v4384_v16, %v5375_v35  ;;  %v151_v35 = vperm.slane %v4213_v54, 1 }
  0xf9   :  { %1765 = vmatpush.msra.mxu2 %v4362_v39  ;;  %1811 = vmatpush.msra.mxu3 %v4348_v5  ;;  %v4490_v54 = vsub.f32 %v1553_v31, %v4456_v46 }
  0xfa   :  { %1617 = vmatpush.msra.mxu0 %v4353_v37  ;;  %1682 = vmatpush.msra.mxu1 %v1681_v58  ;;  %v1710_v58 = vsub.f32 %v4399_v15, %v5381_v56  ;;  %v1705_v17 = vand.u32 4294901760, %v1704_v34  ;;  %v1629_v56 = vsub.f32 %v4411_v60, %v5384_v7 }
  0xfb   :  { %1768 = vmatpush.msra.mxu2 %v4372_v22  ;;  %1813 = vmatpush.msra.mxu3 %v4353_v37 }
  0xfc   :  { %1619 = vmatpush.msra.mxu0 %v4374_v40  ;;  %1688 = vmatpush.msra.mxu1 %v1687_v57  ;;  %v1985_v57 = vsub.f32 %v4424_v9, %v5389_v10  ;;  %v1711_v26 = vand.u32 4294901760, %v1710_v58  ;;  %v5541_v10 = vand.u32 4294901760, %v4437_v21  ;;  %v1630_v58 = vand.u32 4294901760, %v1629_v56 }
  0xfd   :  { %1771 = vmatpush.msra.mxu2 %v4384_v16  ;;  %1815 = vmatpush.msra.mxu3 %v4374_v40  ;;  %v4494_v40 = vand.u32 4294901760, %v1550_v41  ;;  %v4518_v56 = vand.u32 4294901760, %v1549_v45 }
  0xfe   :  { %1621 = vmatpush.msra.mxu0 %v4407_v38  ;;  %1694 = vmatpush.msra.mxu1 %v1693_v28  ;;  %v537_v34 = vpop.f32.mrf.mxu2  ;;  %v638_v32 = vpop.f32.mrf.mxu3  ;;  %v1980_v28 = vand.u32 4294901760, %v1979_v44  ;;  %v1548_v44 = vld [vmem:[#allocation8 + $0xb0] sm:$0xff] }
  0xff   :  { %1774 = vmatpush.msra.mxu2 %v4399_v15  ;;  %1817 = vmatpush.msra.mxu3 %v4407_v38  ;;  %v538_v7 = vadd.f32 %v537_v34, %v151_v35  ;;  %v1716_v35 = vsub.f32 %v4437_v21, %v5541_v10  ;;  %v1991_v38 = vsub.f32 %v4450_v63, %v5542_v61  ;;  %v5545_v61 = vand.u32 4294901760, %v4466_v14 }
 0x100   :  { %1623 = vmatpush.msra.mxu0 %v4417_v30  ;;  %1700 = vmatpush.msra.mxu1 %v1699_v6  ;;  %v4503_v6 = vsub.f32 %v1552_v18, %v4474_v4  ;;  %v4513_v10 = vsub.f32 %v1551_v33, %v4482_v49  ;;  %v5544_v18 = vand.u32 4294901760, %v4411_v60  ;;  %v4526_v31 = vsub.f32 %v1550_v41, %v4494_v40 }
 0x101   :  { %1777 = vmatpush.msra.mxu2 %v4437_v21  ;;  %1819 = vmatpush.msra.mxu3 %v4417_v30  ;;  %v639_v34 = vadd.f32 %v638_v32, %v538_v7  ;;  %v5543_v30 = vand.u32 4294901760, %v4447_v3  ;;  %v1986_v32 = vand.u32 4294901760, %v1985_v57  ;;  %v4528_v63 = vand.u32 4294901760, %v1548_v44  ;;  %v1547_v57 = vld [vmem:[#allocation8 + $0xa8] sm:$0xff] }
 0x102   :  { %1625 = vmatpush.msra.mxu0 %v4439_v55  ;;  %1706 = vmatpush.msra.mxu1 %v1705_v17  ;;  %v5546_v7 = vand.u32 4294901760, %v4246_v2  ;;  %v5400_v37 = vand.u32 4294901760, %v4503_v6  ;;  %v5548_v2 = vand.u32 4294901760, %v4256_v48 }
 0x103   :  { %v1722_v9 = vsub.f32 %v4447_v3, %v5543_v30  ;;  %1780 = vmatpush.msra.mxu2 %v4447_v3  ;;  %1821 = vmatpush.msra.mxu3 %v4439_v55  ;;  %v692_v17 = vpop.f32.mrf.mxu0  ;;  %v1997_v30 = vsub.f32 %v4466_v14, %v5545_v61  ;;  %v1717_v55 = vand.u32 4294901760, %v1716_v35  ;;  %v1546_v14 = vld [vmem:[#allocation8 + $0xa0] sm:$0xff]  ;;  %v4552_v48 = vsub.f32 %v1548_v44, %v4528_v63 }
 0x104   :  { %1631 = vmatmul.f32.vlgmr.msra.gmra.mxu0 %v1630_v58  ;;  %1825 = vmatmul.f32.vlgmr.msra.gmra.mxu3 %v5544_v18  ;;  %v693_v33 = vadd.f32 %v692_v17, %v639_v34  ;;  %v5547_v58 = vand.u32 4294901760, %v4471_v1  ;;  %v1992_v34 = vand.u32 4294901760, %v1991_v38  ;;  %v4547_v38 = vand.u32 4294901760, %v1547_v57 }
 0x105   :  { %1832 = vmatpush.msrb.mxu0 %v5546_v7  ;;  %1981 = vmatpush.msrb.mxu3 %v1980_v28  ;;  %v1723_v41 = vand.u32 4294901760, %v1722_v9  ;;  %v5549_v28 = vand.u32 4294901760, %v4490_v54  ;;  %v1998_v9 = vand.u32 4294901760, %v1997_v30  ;;  %v4559_v17 = vand.u32 4294901760, %v1546_v14 }
 0x106   :  { %v1728_v18 = vsub.f32 %v4471_v1, %v5547_v58  ;;  %1712 = vmatpush.msra.mxu1 %v1711_v26  ;;  %1783 = vmatpush.msra.mxu2 %v4471_v1  ;;  %v731_v61 = vpop.f32.mrf.mxu1  ;;  %v4545_v26 = vsub.f32 %v1549_v45, %v4518_v56  ;;  %v2009_v45 = vsub.f32 %v4503_v6, %v5400_v37 }
 0x107   :  { %1786 = vmatmul.f32.vlgmr.msra.gmra.mxu2 %v4411_v60  ;;  %1836 = vmatpush.msrb.mxu0 %v5548_v2  ;;  %v2003_v35 = vsub.f32 %v4490_v54, %v5549_v28  ;;  %v732_v7 = vadd.f32 %v731_v61, %v693_v33  ;;  %v800_v58 = vpop.f32.mrf.mxu2  ;;  %v5401_v60 = vand.u32 4294901760, %v4526_v31  ;;  %v1545_v2 = vld [vmem:[#allocation8 + $0x98] sm:$0xff]  ;;  %v5550_v28 = vand.u32 4294901760, %v4272_v27 }
 0x108   :  { %1936 = vmatpush.msrb.mxu2 %v4376_v43  ;;  %1987 = vmatpush.msrb.mxu3 %v1986_v32  ;;  %v1729_v33 = vand.u32 4294901760, %v1728_v18  ;;  %v5551_v32 = vand.u32 4294901760, %v4513_v10  ;;  %v5552_v27 = vand.u32 4294901760, %v4280_v20  ;;  %v5553_v20 = vand.u32 4294901760, %v4291_v47 }
 0x109   :  { %1718 = vmatpush.msra.mxu1 %v1717_v55  ;;  %1840 = vmatpush.msrb.mxu0 %v5550_v28  ;;  %v801_v61 = vadd.f32 %v800_v58, %v732_v7  ;;  %v1544_v55 = vld [vmem:[#allocation8 + $0x90] sm:$0xff]  ;;  %v2004_v18 = vand.u32 4294901760, %v2003_v35  ;;  %v2026_v28 = vand.u32 4294901760, %v4545_v26  ;;  %v4569_v7 = vsub.f32 %v1547_v57, %v4547_v38 }
 0x10a   :  { %1938 = vmatpush.msrb.mxu2 %v4395_v42  ;;  %1993 = vmatpush.msrb.mxu3 %v1992_v34  ;;  %v2015_v44 = vsub.f32 %v4513_v10, %v5551_v32  ;;  %v837_v30 = vpop.f32.mrf.mxu3  ;;  %v4571_v58 = vand.u32 4294901760, %v1545_v2  ;;  %v2021_v34 = vsub.f32 %v4526_v31, %v5401_v60  ;;  %v1543_v32 = vld [vmem:[#allocation8 + $0x88] sm:$0xff]  ;;  %v2010_v35 = vand.u32 4294901760, %v2009_v45  ;;  %v1542_v60 = vld [vmem:[#allocation8 + $0x80] sm:$0xff] }
 0x10b   :  { %1724 = vmatpush.msra.mxu1 %v1723_v41  ;;  %1844 = vmatpush.msrb.mxu0 %v5552_v27  ;;  %v2032_v41 = vand.u32 4294901760, %v4552_v48  ;;  %v838_v27 = vadd.f32 %v837_v30, %v801_v61  ;;  %v4581_v57 = vsub.f32 %v1546_v14, %v4559_v17  ;;  %v4583_v37 = vand.u32 4294901760, %v1544_v55 }
 0x10c   :  { %1940 = vmatpush.msrb.mxu2 %v4419_v19  ;;  %1999 = vmatpush.msrb.mxu3 %v1998_v9  ;;  %v2016_v9 = vand.u32 4294901760, %v2015_v44  ;;  %v2027_v47 = vsub.f32 %v4545_v26, %v2026_v28  ;;  %v4593_v14 = vsub.f32 %v1545_v2, %v4571_v58  ;;  %v4595_v45 = vand.u32 4294901760, %v1543_v32 }
 0x10d   :  { %1730 = vmatpush.msra.mxu1 %v1729_v33  ;;  %1848 = vmatpush.msrb.mxu0 %v5553_v20  ;;  %v2038_v33 = vand.u32 4294901760, %v4569_v7  ;;  %v5554_v61 = vand.u32 4294901760, %v4308_v23  ;;  %v2022_v44 = vand.u32 4294901760, %v2021_v34  ;;  %v1523_v30 = vmax.f32 %v838_v27, 0.0 }
 0x10e   :  { %1732 = vmatmul.f32.vlgmr.msra.gmra.mxu1 %v4386_v50  ;;  %1942 = vmatpush.msrb.mxu2 %v4432_v0  ;;  %v4606_v2 = vsub.f32 %v1544_v55, %v4583_v37  ;;  %v4608_v20 = vand.u32 4294901760, %v1542_v60  ;;  %v5555_v23 = vand.u32 4294901760, %v4322_v25  ;;  %v2028_v34 = vand.u32 4294901760, %v2027_v47 }
 0x10f   :  { %1899 = vmatpush.msrb.mxu1 %v4231_v29  ;;  %2005 = vmatpush.msrb.mxu3 %v2004_v18  ;;  %v2033_v29 = vsub.f32 %v4552_v48, %v2032_v41  ;;  %v2044_v18 = vand.u32 4294901760, %v4581_v57  ;;  %v4619_v55 = vsub.f32 %v1543_v32, %v4595_v45  ;;  %v5556_v27 = vand.u32 4294901760, %v4327_v11 }
 0x110   :  { %1852 = vmatpush.msrb.mxu0 %v5554_v61  ;;  %1944 = vmatpush.msrb.mxu2 %v4456_v46  ;;  %v2056_v47 = vand.u32 4294901760, %v4606_v2  ;;  %v4632_v32 = vsub.f32 %v1542_v60, %v4608_v20  ;;  %v5557_v11 = vand.u32 4294901760, %v4344_v53 }
 0x111   :  { %1901 = vmatpush.msrb.mxu1 %v4238_v59  ;;  %2011 = vmatpush.msrb.mxu3 %v2010_v35  ;;  %v2039_v59 = vsub.f32 %v4569_v7, %v2038_v33  ;;  %v2050_v35 = vand.u32 4294901760, %v4593_v14  ;;  %v2034_v25 = vand.u32 4294901760, %v2033_v29  ;;  %v5558_v29 = vand.u32 4294901760, %v4362_v39 }
 0x112   :  { %1856 = vmatpush.msrb.mxu0 %v5555_v23  ;;  %1946 = vmatpush.msrb.mxu2 %v4474_v4  ;;  %v2057_v60 = vsub.f32 %v4606_v2, %v2056_v47  ;;  %v2068_v23 = vand.u32 4294901760, %v4632_v32 }
 0x113   :  { %1903 = vmatpush.msrb.mxu1 %v4251_v36  ;;  %2017 = vmatpush.msrb.mxu3 %v2016_v9  ;;  %v4625_v36 = vand.u32 4294901760, %v1523_v30  ;;  %v2045_v9 = vsub.f32 %v4581_v57, %v2044_v18  ;;  %v2051_v61 = vsub.f32 %v4593_v14, %v2050_v35 }
 0x114   :  { %1860 = vmatpush.msrb.mxu0 %v5556_v27  ;;  %1948 = vmatpush.msrb.mxu2 %v4482_v49  ;;  %v5561_v27 = vand.u32 4294901760, %v4399_v15 }
 0x115   :  { %1905 = vmatpush.msrb.mxu1 %v4261_v51  ;;  %2023 = vmatpush.msrb.mxu3 %v2022_v44  ;;  %v2040_v51 = vand.u32 4294901760, %v2039_v59  ;;  %v2062_v44 = vand.u32 4294901760, %v4619_v55  ;;  %v4646_v53 = vsub.f32 %v1523_v30, %v4625_v36  ;;  %v2052_v39 = vand.u32 4294901760, %v2051_v61  ;;  %v5571_v61 = vld [vmem:[#allocation27_spill] sm:$0xff] }
 0x116   :  { %1864 = vmatpush.msrb.mxu0 %v5557_v11  ;;  %1950 = vmatpush.msrb.mxu2 %v4494_v40  ;;  %v5560_v30 = vand.u32 4294901760, %v4384_v16 }
 0x117   :  { %1907 = vmatpush.msrb.mxu1 %v4265_v13  ;;  %2029 = vmatpush.msrb.mxu3 %v2028_v34  ;;  %v2046_v13 = vand.u32 4294901760, %v2045_v9  ;;  %v5559_v34 = vand.u32 4294901760, %v4372_v22  ;;  %v1969_v59 = vand.u32 4294901760, %v4646_v53  ;;  %v2058_v22 = vand.u32 4294901760, %v2057_v60  ;;  %v5574_v60 = vld [vmem:[#allocation20_spill] sm:$0xff] }
 0x118   :  { %1868 = vmatpush.msrb.mxu0 %v5558_v29  ;;  %1952 = vmatpush.msrb.mxu2 %v4518_v56  ;;  %v5563_v9 = vand.u32 4294901760, %v4447_v3  ;;  %v5567_v3 = vld [vmem:[#allocation18_spill] sm:$0xff] }
 0x119   :  { %1909 = vmatpush.msrb.mxu1 %v4282_v62  ;;  %2035 = vmatpush.msrb.mxu3 %v2034_v25  ;;  %v2063_v62 = vsub.f32 %v4619_v55, %v2062_v44  ;;  %v5562_v25 = vand.u32 4294901760, %v4437_v21  ;;  %v5565_v21 = vld [vmem:[#allocation19_spill] sm:$0xff] }
 0x11a   :  { %1872 = vmatpush.msrb.mxu0 %v5559_v34  ;;  %1954 = vmatpush.msrb.mxu2 %v4528_v63  ;;  %v5575_v34 = vand.u32 4294901760, %v5571_v61 }
 0x11b   :  { %1911 = vmatpush.msrb.mxu1 %v4295_v24  ;;  %2041 = vmatpush.msrb.mxu3 %v2040_v51  ;;  %v2069_v24 = vsub.f32 %v4632_v32, %v2068_v23  ;;  %v2064_v16 = vand.u32 4294901760, %v2063_v62  ;;  %v5570_v51 = vld [vmem:[#allocation22_spill] sm:$0xff]  ;;  %v5577_v62 = vand.u32 4294901760, %v5574_v60 }
 0x11c   :  { %1876 = vmatpush.msrb.mxu0 %v5560_v30  ;;  %1956 = vmatpush.msrb.mxu2 %v4547_v38  ;;  %v5578_v30 = vand.u32 4294901760, %v4490_v54 }
 0x11d   :  { %1913 = vmatpush.msrb.mxu1 %v4303_v12  ;;  %2047 = vmatpush.msrb.mxu3 %v2046_v13  ;;  %v1970_v12 = vsub.f32 %v4646_v53, %v1969_v59  ;;  %v2070_v15 = vand.u32 4294901760, %v2069_v24  ;;  %v5573_v13 = vld [vmem:[#allocation26_spill] sm:$0xff] }
 0x11e   :  { %1880 = vmatpush.msrb.mxu0 %v5561_v27  ;;  %1958 = vmatpush.msrb.mxu2 %v4559_v17 }
 0x11f   :  { %1915 = vmatpush.msrb.mxu1 %v4313_v52  ;;  %2053 = vmatpush.msrb.mxu3 %v2052_v39  ;;  %v5564_v52 = vand.u32 4294901760, %v4471_v1  ;;  %v1971_v11 = vand.u32 4294901760, %v1970_v12  ;;  %v5568_v1 = vld [vmem:[#allocation24_spill] sm:$0xff]  ;;  %v5576_v39 = vld [vmem:[#allocation23_spill] sm:$0xff] }
 0x120   :  { %1884 = vmatpush.msrb.mxu0 %v5562_v25  ;;  %1960 = vmatpush.msrb.mxu2 %v4571_v58  ;;  %v5572_v29 = vand.u32 4294901760, %v5568_v1 }
 0x121   :  { %1917 = vmatpush.msrb.mxu1 %v4336_v8  ;;  %2059 = vmatpush.msrb.mxu3 %v2058_v22  ;;  %v5566_v8 = vld [vmem:[#allocation21_spill] sm:$0xff] }
 0x122   :  { %1888 = vmatpush.msrb.mxu0 %v5563_v9  ;;  %1962 = vmatpush.msrb.mxu2 %v4583_v37  ;;  %v1567_v22 = vld [vmem:[#allocation8 + $0x148] sm:$0xff] }
 0x123   :  { %1919 = vmatpush.msrb.mxu1 %v4348_v5  ;;  %2065 = vmatpush.msrb.mxu3 %v2064_v16  ;;  %v5569_v5 = vand.u32 4294901760, %v5566_v8  ;;  %v1566_v16 = vld [vmem:[#allocation8 + $0x140] sm:$0xff] }
 0x124   :  { %1892 = vmatpush.msrb.mxu0 %v5564_v52  ;;  %1964 = vmatpush.msrb.mxu2 %v4595_v45  ;;  %v4824_v52 = vand.u32 4294901760, %v1566_v16 }
 0x125   :  { %1921 = vmatpush.msrb.mxu1 %v5565_v21  ;;  %2071 = vmatpush.msrb.mxu3 %v2070_v15  ;;  %v4812_v15 = vand.u32 4294901760, %v1567_v22 }
 0x126   :  { %1894 = vmatmul.f32.vlgmr.msrb.gmra.mxu0 %v4386_v50  ;;  %2073 = vmatmul.f32.vlgmr.msrb.gmra.mxu3 %v4625_v36 }
 0x127   :  { %2079 = vmatpush.msra.mxu0 %v5566_v8  ;;  %2240 = vmatpush.msra.mxu3 %v4376_v43 }
 0x128   :  { %1923 = vmatpush.msrb.mxu1 %v5567_v3  ;;  %1966 = vmatpush.msrb.mxu2 %v4608_v20  ;;  %v4835_v3 = vsub.f32 %v1567_v22, %v4812_v15 }
 0x129   :  { %1972 = vmatmul.f32.vlgmr.msrb.gmra.mxu2 %v1971_v11  ;;  %2082 = vmatpush.msra.mxu0 %v5568_v1  ;;  %v1564_v11 = vld [vmem:[#allocation8 + $0x130] sm:$0xff] }
 0x12a   :  { %2173 = vmatpush.msra.mxu2 %v5569_v5  ;;  %2242 = vmatpush.msra.mxu3 %v4395_v42 }
 0x12b   :  { %1925 = vmatpush.msrb.mxu1 %v5570_v51  ;;  %2085 = vmatpush.msra.mxu0 %v5571_v61  ;;  %v4844_v61 = vand.u32 4294901760, %v1564_v11 }
 0x12c   :  { %2177 = vmatpush.msra.mxu2 %v5572_v29  ;;  %2244 = vmatpush.msra.mxu3 %v4419_v19  ;;  %v1563_v29 = vld [vmem:[#allocation8 + $0x128] sm:$0xff] }
 0x12d   :  { %1927 = vmatpush.msrb.mxu1 %v5573_v13  ;;  %2088 = vmatpush.msra.mxu0 %v5574_v60  ;;  %v4852_v60 = vsub.f32 %v1566_v16, %v4824_v52  ;;  %v1559_v16 = vld [vmem:[#allocation8 + $0x108] sm:$0xff] }
 0x12e   :  { %2181 = vmatpush.msra.mxu2 %v5575_v34  ;;  %2246 = vmatpush.msra.mxu3 %v4432_v0 }
 0x12f   :  { %1929 = vmatpush.msrb.mxu1 %v5576_v39  ;;  %2091 = vmatpush.msra.mxu0 %v4490_v54  ;;  %v5581_v54 = vand.u32 4294901760, %v4526_v31 }
 0x130   :  { %1931 = vmatmul.f32.vlgmr.msrb.gmra.mxu1 %v4386_v50  ;;  %2185 = vmatpush.msra.mxu2 %v5577_v62  ;;  %v5579_v50 = vand.u32 4294901760, %v4503_v6  ;;  %v1562_v62 = vld [vmem:[#allocation8 + $0x120] sm:$0xff] }
 0x131   :  { %2132 = vmatpush.msra.mxu1 %v4376_v43  ;;  %2248 = vmatpush.msra.mxu3 %v4456_v46  ;;  %v5580_v43 = vand.u32 4294901760, %v4513_v10 }
 0x132   :  { %2094 = vmatpush.msra.mxu0 %v4503_v6  ;;  %2189 = vmatpush.msra.mxu2 %v5578_v30 }
 0x133   :  { %2134 = vmatpush.msra.mxu1 %v4395_v42  ;;  %2250 = vmatpush.msra.mxu3 %v4474_v4  ;;  %v5582_v42 = vld [vmem:[#allocation25_spill] sm:$0xff] }
 0x134   :  { %2097 = vmatpush.msra.mxu0 %v4513_v10  ;;  %2193 = vmatpush.msra.mxu2 %v5579_v50  ;;  %v1571_v10 = vld [vmem:[#allocation8 + $0x168] sm:$0xff]  ;;  %v4865_v50 = vand.u32 4294901760, %v1563_v29 }
 0x135   :  { %2136 = vmatpush.msra.mxu1 %v4419_v19  ;;  %2252 = vmatpush.msra.mxu3 %v4482_v49  ;;  %v152_v19 = vperm.slane %v5582_v42, 2  ;;  %v4872_v42 = vsub.f32 %v1564_v11, %v4844_v61 }
 0x136   :  { %2100 = vmatpush.msra.mxu0 %v4526_v31  ;;  %2197 = vmatpush.msra.mxu2 %v5580_v43  ;;  %v1572_v31 = vld [vmem:[#allocation8 + $0x170] sm:$0xff]  ;;  %v5406_v43 = vand.u32 4294901760, %v4835_v3 }
 0x137   :  { %2138 = vmatpush.msra.mxu1 %v4432_v0  ;;  %2254 = vmatpush.msra.mxu3 %v4494_v40 }
 0x138   :  { %2103 = vmatpush.msra.mxu0 %v4545_v26  ;;  %2201 = vmatpush.msra.mxu2 %v5581_v54 }
 0x139   :  { %2140 = vmatpush.msra.mxu1 %v4456_v46  ;;  %2256 = vmatpush.msra.mxu3 %v4518_v56  ;;  %v1573_v46 = vld [vmem:[#allocation8 + $0x178] sm:$0xff] }
 0x13a   :  { %2106 = vmatpush.msra.mxu0 %v4552_v48  ;;  %2205 = vmatpush.msra.mxu2 %v2026_v28  ;;  %v4750_v6 = vand.u32 4294901760, %v1573_v46 }
 0x13b   :  { %2142 = vmatpush.msra.mxu1 %v4474_v4  ;;  %2258 = vmatpush.msra.mxu3 %v4528_v63  ;;  %v878_v0 = vpop.f32.mrf.mxu0 }
 0x13c   :  { %2109 = vmatpush.msra.mxu0 %v4569_v7  ;;  %2209 = vmatpush.msra.mxu2 %v2032_v41  ;;  %v879_v4 = vadd.f32 %v878_v0, %v152_v19  ;;  %v1570_v7 = vld [vmem:[#allocation8 + $0x160] sm:$0xff] }
 0x13d   :  { %2144 = vmatpush.msra.mxu1 %v4482_v49  ;;  %2260 = vmatpush.msra.mxu3 %v4547_v38  ;;  %v4757_v49 = vand.u32 4294901760, %v1572_v31 }
 0x13e   :  { %2112 = vmatpush.msra.mxu0 %v4581_v57  ;;  %2213 = vmatpush.msra.mxu2 %v2038_v33  ;;  %v1569_v57 = vld [vmem:[#allocation8 + $0x158] sm:$0xff] }
 0x13f   :  { %2146 = vmatpush.msra.mxu1 %v4494_v40  ;;  %2262 = vmatpush.msra.mxu3 %v4559_v17  ;;  %v4762_v40 = vand.u32 4294901760, %v1571_v10  ;;  %v4775_v33 = vsub.f32 %v1572_v31, %v4757_v49  ;;  %v5404_v31 = vand.u32 4294901760, %v4852_v60 }
 0x140   :  { %2115 = vmatpush.msra.mxu0 %v4593_v14  ;;  %2217 = vmatpush.msra.mxu2 %v2044_v18 }
 0x141   :  { %2148 = vmatpush.msra.mxu1 %v4518_v56  ;;  %2264 = vmatpush.msra.mxu3 %v4571_v58  ;;  %v979_v26 = vpop.f32.mrf.mxu1  ;;  %v1033_v48 = vpop.f32.mrf.mxu2  ;;  %v4767_v56 = vsub.f32 %v1573_v46, %v4750_v6  ;;  %v4783_v18 = vsub.f32 %v1571_v10, %v4762_v40  ;;  %v4878_v46 = vand.u32 4294901760, %v1562_v62  ;;  %v2362_v22 = vsub.f32 %v4852_v60, %v5404_v31  ;;  %v1584_v31 = vld [vmem:[#allocation8 + $0x1d0] sm:$0xff] }
 0x142   :  { %2118 = vmatpush.msra.mxu0 %v4606_v2  ;;  %2221 = vmatpush.msra.mxu2 %v2050_v35  ;;  %v980_v28 = vadd.f32 %v979_v26, %v879_v4  ;;  %v1072_v14 = vpop.f32.mrf.mxu3  ;;  %v1568_v2 = vld [vmem:[#allocation8 + $0x150] sm:$0xff] }
 0x143   :  { %2150 = vmatpush.msra.mxu1 %v4528_v63  ;;  %2266 = vmatpush.msra.mxu3 %v4583_v37  ;;  %v4777_v63 = vand.u32 4294901760, %v1570_v7  ;;  %v5415_v35 = vand.u32 4294901760, %v4767_v56  ;;  %v5411_v27 = vand.u32 4294901760, %v4783_v18  ;;  %5583 = vst [vmem:[#allocation19_spill] sm:$0xff] %v4878_v46  ;;  %v1588_v26 = vld [vmem:[#allocation8 + $0x1f0] sm:$0xff] }
 0x144   :  { %2121 = vmatpush.msra.mxu0 %v4619_v55  ;;  %2225 = vmatpush.msra.mxu2 %v2056_v47  ;;  %v1034_v41 = vadd.f32 %v1033_v48, %v980_v28  ;;  %v2356_v28 = vsub.f32 %v4835_v3, %v5406_v43  ;;  %v3055_v43 = vld [vmem:[#allocation7] sm:$0xf] }
 0x145   :  { %2152 = vmatpush.msra.mxu1 %v4547_v38  ;;  %2268 = vmatpush.msra.mxu3 %v4595_v45  ;;  %v4787_v38 = vand.u32 4294901760, %v1569_v57  ;;  %v4795_v55 = vsub.f32 %v1570_v7, %v4777_v63  ;;  %v2320_v25 = vsub.f32 %v4767_v56, %v5415_v35  ;;  %v4892_v7 = vsub.f32 %v1563_v29, %v4865_v50 }
 0x146   :  { %2124 = vmatpush.msra.mxu0 %v4632_v32  ;;  %2229 = vmatpush.msra.mxu2 %v2062_v44  ;;  %v1073_v47 = vadd.f32 %v1072_v14, %v1034_v41  ;;  %v5412_v44 = vand.u32 4294901760, %v4775_v33  ;;  %v1565_v32 = vld [vmem:[#allocation8 + $0x138] sm:$0xff]  ;;  %v1560_v14 = vld [vmem:[#allocation8 + $0x110] sm:$0xff] }
 0x147   :  { %2154 = vmatpush.msra.mxu1 %v4559_v17  ;;  %2270 = vmatpush.msra.mxu3 %v4608_v20  ;;  %v4797_v17 = vand.u32 4294901760, %v1568_v2  ;;  %v1141_v24 = vpop.f32.mrf.mxu0  ;;  %v4810_v12 = vsub.f32 %v1569_v57, %v4787_v38  ;;  %v5410_v21 = vand.u32 4294901760, %v4795_v55  ;;  %v2321_v8 = vand.u32 4294901760, %v2320_v25 }
 0x148   :  { %2127 = vmatmul.f32.vlgmr.msra.gmra.mxu0 %v4646_v53  ;;  %2272 = vmatmul.f32.vlgmr.msra.gmra.mxu3 %v4625_v36  ;;  %v4837_v1 = vand.u32 4294901760, %v1565_v32  ;;  %v1561_v53 = vld [vmem:[#allocation8 + $0x118] sm:$0xff]  ;;  %v4907_v25 = vand.u32 4294901760, %v1588_v26 }
 0x149   :  { %2277 = vmatpush.msrb.mxu0 %v4750_v6  ;;  %2473 = vmatpush.msrb.mxu3 %v4750_v6  ;;  %v1178_v9 = vpop.f32.mrf.mxu1  ;;  %v5408_v5 = vand.u32 4294901760, %v4810_v12  ;;  %v2338_v13 = vsub.f32 %v4795_v55, %v5410_v21  ;;  %v4883_v4 = vand.u32 4294901760, %v1561_v53 }
 0x14a   :  { %2156 = vmatpush.msra.mxu1 %v4571_v58  ;;  %2233 = vmatpush.msra.mxu2 %v2068_v23  ;;  %v1142_v58 = vadd.f32 %v1141_v24, %v1073_v47  ;;  %v4822_v23 = vsub.f32 %v1568_v2, %v4797_v17  ;;  %v4863_v30 = vsub.f32 %v1565_v32, %v4837_v1  ;;  %v5402_v2 = vand.u32 4294901760, %v4872_v42 }
 0x14b   :  { %2235 = vmatmul.f32.vlgmr.msra.gmra.mxu2 %v4625_v36  ;;  %2279 = vmatpush.msrb.mxu0 %v4757_v49  ;;  %v2326_v36 = vsub.f32 %v4775_v33, %v5412_v44  ;;  %v2339_v19 = vand.u32 4294901760, %v2338_v13  ;;  %5584 = vst [vmem:[#allocation21_spill] sm:$0xff] %v4883_v4  ;;  %v4905_v24 = vsub.f32 %v1562_v62, %v4878_v46  ;;  %v4932_v13 = vand.u32 4294901760, %v1559_v16  ;;  %v1582_v44 = vld [vmem:[#allocation8 + $0x1c0] sm:$0xff] }
 0x14c   :  { %2420 = vmatpush.msrb.mxu2 %v4767_v56  ;;  %2475 = vmatpush.msrb.mxu3 %v4757_v49  ;;  %v4842_v51 = vadd.f32 %v1178_v9, %v1142_v58  ;;  %v5407_v34 = vand.u32 4294901760, %v4822_v23  ;;  %v5403_v41 = vand.u32 4294901760, %v4863_v30  ;;  %v1587_v58 = vld [vmem:[#allocation8 + $0x1e8] sm:$0xff]  ;;  %v4912_v32 = vsub.f32 %v1561_v53, %v4883_v4 }
 0x14d   :  { %2158 = vmatpush.msra.mxu1 %v4583_v37  ;;  %2281 = vmatpush.msrb.mxu0 %v4762_v40  ;;  %v2332_v37 = vsub.f32 %v4783_v18, %v5411_v27  ;;  %v2357_v9 = vand.u32 4294901760, %v2356_v28  ;;  %5587 = vst [vmem:[#allocation22_spill] sm:$0xff] %v4932_v13  ;;  %v4934_v62 = vand.u32 4294901760, %v1587_v58  ;;  %v5409_v53 = vand.u32 4294901760, %v4905_v24 }
 0x14e   :  { %2423 = vmatpush.msrb.mxu2 %v4775_v33  ;;  %2477 = vmatpush.msrb.mxu3 %v4762_v40  ;;  %v1524_v54 = vmax.f32 %v4842_v51, 0.0  ;;  %v2350_v0 = vsub.f32 %v4822_v23, %v5407_v34  ;;  %v2368_v11 = vsub.f32 %v4863_v30, %v5403_v41  ;;  %v1586_v51 = vld [vmem:[#allocation8 + $0x1e0] sm:$0xff]  ;;  %v153_v34 = vperm.slane %v3055_v43, 3 }
 0x14f   :  { %2160 = vmatpush.msra.mxu1 %v4595_v45  ;;  %2283 = vmatpush.msrb.mxu0 %v4777_v63  ;;  %v2327_v45 = vand.u32 4294901760, %v2326_v36  ;;  %v2333_v39 = vand.u32 4294901760, %v2332_v37  ;;  %v4921_v37 = vand.u32 4294901760, %v1560_v14  ;;  %v4988_v27 = vand.u32 4294901760, %v1584_v31 }
 0x150   :  { %2426 = vmatpush.msrb.mxu2 %v4783_v18  ;;  %2479 = vmatpush.msrb.mxu3 %v4777_v63  ;;  %v4895_v57 = vand.u32 4294901760, %v1524_v54  ;;  %v2351_v47 = vand.u32 4294901760, %v2350_v0  ;;  %v4945_v0 = vand.u32 4294901760, %v1586_v51  ;;  %v2369_v28 = vand.u32 4294901760, %v2368_v11 }
 0x151   :  { %2162 = vmatpush.msra.mxu1 %v4608_v20  ;;  %2285 = vmatpush.msrb.mxu0 %v4787_v38  ;;  %v2344_v20 = vsub.f32 %v4810_v12, %v5408_v5  ;;  %5586 = vst [vmem:[#allocation24_spill] sm:$0xff] %v4921_v37  ;;  %v4963_v11 = vsub.f32 %v1587_v58, %v4934_v62 }
 0x152   :  { %2166 = vmatmul.f32.vlgmr.msra.gmra.mxu1 %v1969_v59  ;;  %2429 = vmatpush.msrb.mxu2 %v4795_v55  ;;  %v1589_v59 = vld [vmem:[#allocation8 + $0x1f8] sm:$0xff]  ;;  %v4925_v29 = vsub.f32 %v1524_v54, %v4895_v57 }
 0x153   :  { %2322 = vmatpush.msrb.mxu1 %v2321_v8  ;;  %2481 = vmatpush.msrb.mxu3 %v4787_v38  ;;  %v4885_v10 = vand.u32 4294901760, %v1589_v59  ;;  %v2345_v48 = vand.u32 4294901760, %v2344_v20  ;;  %v5405_v8 = vand.u32 4294901760, %v4892_v7  ;;  %v2363_v20 = vand.u32 4294901760, %v2362_v22  ;;  %5590 = vst [vmem:[#allocation20_spill] sm:$0xff] %v4963_v11 }
 0x154   :  { %2287 = vmatpush.msrb.mxu0 %v4797_v17  ;;  %2432 = vmatpush.msrb.mxu2 %v4810_v12 }
 0x155   :  { %2328 = vmatpush.msrb.mxu1 %v2327_v45  ;;  %2483 = vmatpush.msrb.mxu3 %v4797_v17  ;;  %v4915_v36 = vsub.f32 %v1589_v59, %v4885_v10  ;;  %v2374_v45 = vsub.f32 %v4872_v42, %v5402_v2  ;;  %v4939_v59 = vsub.f32 %v1588_v26, %v4907_v25  ;;  %v5416_v2 = vand.u32 4294901760, %v4925_v29 }
 0x156   :  { %2289 = vmatpush.msrb.mxu0 %v4812_v15  ;;  %2435 = vmatpush.msrb.mxu2 %v4822_v23  ;;  %v2380_v26 = vsub.f32 %v4892_v7, %v5405_v8 }
 0x157   :  { %2334 = vmatpush.msrb.mxu1 %v2333_v39  ;;  %2485 = vmatpush.msrb.mxu3 %v4812_v15  ;;  %5585 = vst [vmem:[#allocation18_spill] sm:$0xff] %v4915_v36  ;;  %v1558_v39 = vld [vmem:[#allocation8 + $0x100] sm:$0xff]  ;;  %v5413_v54 = vand.u32 4294901760, %v4915_v36  ;;  %v2375_v41 = vand.u32 4294901760, %v2374_v45  ;;  %v5421_v8 = vand.u32 4294901760, %v4939_v59  ;;  %v1583_v45 = vld [vmem:[#allocation8 + $0x1c8] sm:$0xff] }
 0x158   :  { %2291 = vmatpush.msrb.mxu0 %v4824_v52  ;;  %2438 = vmatpush.msrb.mxu2 %v4835_v3  ;;  %5588 = vst [vmem:[#allocation27_spill] sm:$0xff] %v4939_v59  ;;  %v4954_v22 = vand.u32 4294901760, %v1558_v39  ;;  %v2381_v43 = vand.u32 4294901760, %v2380_v26 }
 0x159   :  { %2340 = vmatpush.msrb.mxu1 %v2339_v19  ;;  %2487 = vmatpush.msrb.mxu3 %v4824_v52  ;;  %v5414_v19 = vand.u32 4294901760, %v4912_v32 }
 0x15a   :  { %2293 = vmatpush.msrb.mxu0 %v4837_v1  ;;  %2441 = vmatpush.msrb.mxu2 %v4852_v60  ;;  %5589 = vst [vmem:[#allocation26_spill] sm:$0xff] %v4954_v22 }
 0x15b   :  { %2346 = vmatpush.msrb.mxu1 %v2345_v48  ;;  %2489 = vmatpush.msrb.mxu3 %v4837_v1  ;;  %v1585_v48 = vld [vmem:[#allocation8 + $0x1d8] sm:$0xff]  ;;  %v2392_v58 = vsub.f32 %v4912_v32, %v5414_v19  ;;  %v4997_v19 = vand.u32 4294901760, %v1583_v45 }
 0x15c   :  { %2295 = vmatpush.msrb.mxu0 %v4844_v61  ;;  %2444 = vmatpush.msrb.mxu2 %v4863_v30  ;;  %v4970_v5 = vand.u32 4294901760, %v1585_v48 }
 0x15d   :  { %2352 = vmatpush.msrb.mxu1 %v2351_v47  ;;  %2491 = vmatpush.msrb.mxu3 %v4844_v61  ;;  %v4952_v47 = vsub.f32 %v1560_v14, %v4921_v37  ;;  %v2386_v14 = vsub.f32 %v4905_v24, %v5409_v53  ;;  %v4985_v53 = vsub.f32 %v1558_v39, %v4954_v22 }
 0x15e   :  { %2297 = vmatpush.msrb.mxu0 %v4865_v50  ;;  %2447 = vmatpush.msrb.mxu2 %v4872_v42 }
 0x15f   :  { %2358 = vmatpush.msrb.mxu1 %v2357_v9  ;;  %2493 = vmatpush.msrb.mxu3 %v4865_v50  ;;  %v4960_v9 = vsub.f32 %v1559_v16, %v4932_v13  ;;  %v2661_v16 = vsub.f32 %v4915_v36, %v5413_v54  ;;  %v2311_v54 = vsub.f32 %v4925_v29, %v5416_v2  ;;  %v2387_v35 = vand.u32 4294901760, %v2386_v14 }
 0x160   :  { %2299 = vmatpush.msrb.mxu0 %v4878_v46  ;;  %2450 = vmatpush.msrb.mxu2 %v4892_v7  ;;  %v2667_v2 = vsub.f32 %v4939_v59, %v5421_v8  ;;  %v5592_v14 = vand.u32 4294901760, %v4952_v47  ;;  %v5017_v8 = vsub.f32 %v1584_v31, %v4988_v27  ;;  %v5597_v31 = vand.u32 4294901760, %v4767_v56 }
 0x161   :  { %2364 = vmatpush.msrb.mxu1 %v2363_v20  ;;  %2495 = vmatpush.msrb.mxu3 %v4878_v46  ;;  %v4981_v20 = vsub.f32 %v1586_v51, %v4945_v0  ;;  %v2393_v51 = vand.u32 4294901760, %v2392_v58  ;;  %v2312_v58 = vand.u32 4294901760, %v2311_v54  ;;  %v5595_v54 = vand.u32 4294901760, %v4925_v29 }
 0x162   :  { %2301 = vmatpush.msrb.mxu0 %v4883_v4  ;;  %2453 = vmatpush.msrb.mxu2 %v4905_v24  ;;  %v5431_v46 = vand.u32 4294901760, %v5017_v8  ;;  %v5599_v56 = vand.u32 4294901760, %v4775_v33 }
 0x163   :  { %5591 = vst [vmem:[#allocation23_spill] sm:$0xff] %v4981_v20  ;;  %2370 = vmatpush.msrb.mxu1 %v2369_v28  ;;  %2497 = vmatpush.msrb.mxu3 %v4883_v4  ;;  %v5004_v4 = vsub.f32 %v1585_v48, %v4970_v5  ;;  %v2662_v28 = vand.u32 4294901760, %v2661_v16  ;;  %v1580_v16 = vld [vmem:[#allocation8 + $0x1b0] sm:$0xff]  ;;  %v5028_v48 = vsub.f32 %v1583_v45, %v4997_v19 }
 0x164   :  { %2303 = vmatpush.msrb.mxu0 %v4921_v37  ;;  %2456 = vmatpush.msrb.mxu2 %v4912_v32  ;;  %v1219_v26 = vpop.f32.mrf.mxu2  ;;  %v1320_v39 = vpop.f32.mrf.mxu3 }
 0x165   :  { %2376 = vmatpush.msrb.mxu1 %v2375_v41  ;;  %2499 = vmatpush.msrb.mxu3 %v4921_v37  ;;  %v1220_v21 = vadd.f32 %v1219_v26, %v153_v34  ;;  %v5009_v41 = vand.u32 4294901760, %v1582_v44  ;;  %v1581_v37 = vld [vmem:[#allocation8 + $0x1b8] sm:$0xff]  ;;  %v2398_v34 = vsub.f32 %v4952_v47, %v5592_v14 }
 0x166   :  { %2305 = vmatpush.msrb.mxu0 %v4932_v13  ;;  %2459 = vmatpush.msrb.mxu2 %v4952_v47  ;;  %v5032_v59 = vand.u32 4294901760, %v1581_v37 }
 0x167   :  { %2382 = vmatpush.msrb.mxu1 %v2381_v43  ;;  %2501 = vmatpush.msrb.mxu3 %v4932_v13  ;;  %v1321_v26 = vadd.f32 %v1320_v39, %v1220_v21  ;;  %v5593_v43 = vand.u32 4294901760, %v4963_v11  ;;  %v5594_v13 = vand.u32 4294901760, %v4960_v9  ;;  %v2668_v21 = vand.u32 4294901760, %v2667_v2  ;;  %v1579_v2 = vld [vmem:[#allocation8 + $0x1a8] sm:$0xff] }
 0x168   :  { %2307 = vmatpush.msrb.mxu0 %v4954_v22  ;;  %2462 = vmatpush.msrb.mxu2 %v4960_v9  ;;  %v5040_v45 = vsub.f32 %v1582_v44, %v5009_v41 }
 0x169   :  { %v2673_v36 = vsub.f32 %v4963_v11, %v5593_v43  ;;  %v2404_v14 = vsub.f32 %v4960_v9, %v5594_v13  ;;  %2388 = vmatpush.msrb.mxu1 %v2387_v35  ;;  %2503 = vmatpush.msrb.mxu3 %v4954_v22  ;;  %v1374_v39 = vpop.f32.mrf.mxu0  ;;  %v5596_v43 = vand.u32 4294901760, %v4981_v20  ;;  %v5042_v35 = vand.u32 4294901760, %v1580_v16 }
 0x16a   :  { %2313 = vmatmul.f32.vlgmr.msrb.gmra.mxu0 %v2312_v58  ;;  %2507 = vmatmul.f32.vlgmr.msrb.gmra.mxu3 %v5595_v54  ;;  %v1375_v11 = vadd.f32 %v1374_v39, %v1321_v26  ;;  %v2399_v22 = vand.u32 4294901760, %v2398_v34  ;;  %v5598_v58 = vand.u32 4294901760, %v4985_v53 }
 0x16b   :  { %v2679_v13 = vsub.f32 %v4981_v20, %v5596_v43  ;;  %2514 = vmatpush.msra.mxu0 %v5597_v31  ;;  %2663 = vmatpush.msra.mxu3 %v2662_v28  ;;  %v2674_v26 = vand.u32 4294901760, %v2673_v36  ;;  %v2405_v44 = vand.u32 4294901760, %v2404_v14  ;;  %v1578_v20 = vld [vmem:[#allocation8 + $0x1a0] sm:$0xff]  ;;  %v5600_v28 = vand.u32 4294901760, %v5004_v4 }
 0x16c   :  { %v2410_v54 = vsub.f32 %v4985_v53, %v5598_v58  ;;  %2394 = vmatpush.msrb.mxu1 %v2393_v51  ;;  %2465 = vmatpush.msrb.mxu2 %v4985_v53  ;;  %v1413_v43 = vpop.f32.mrf.mxu1  ;;  %v5059_v51 = vsub.f32 %v1581_v37, %v5032_v59  ;;  %v5061_v36 = vand.u32 4294901760, %v1579_v2  ;;  %v5066_v33 = vsub.f32 %v1580_v16, %v5042_v35 }
 0x16d   :  { %2468 = vmatmul.f32.vlgmr.msrb.gmra.mxu2 %v4925_v29  ;;  %2518 = vmatpush.msra.mxu0 %v5599_v56  ;;  %v2685_v34 = vsub.f32 %v5004_v4, %v5600_v28  ;;  %v1414_v31 = vadd.f32 %v1413_v43, %v1375_v11  ;;  %v1482_v58 = vpop.f32.mrf.mxu2  ;;  %v2680_v14 = vand.u32 4294901760, %v2679_v13  ;;  %v5432_v29 = vand.u32 4294901760, %v5040_v45  ;;  %v1577_v56 = vld [vmem:[#allocation8 + $0x198] sm:$0xff] }
 0x16e   :  { %2618 = vmatpush.msra.mxu2 %v4885_v10  ;;  %2669 = vmatpush.msra.mxu3 %v2668_v21  ;;  %v5601_v28 = vand.u32 4294901760, %v4783_v18  ;;  %v2411_v11 = vand.u32 4294901760, %v2410_v54  ;;  %v2691_v37 = vsub.f32 %v5017_v8, %v5431_v46  ;;  %v5073_v39 = vand.u32 4294901760, %v1578_v20 }
 0x16f   :  { %2400 = vmatpush.msrb.mxu1 %v2399_v22  ;;  %v1483_v43 = vadd.f32 %v1482_v58, %v1414_v31  ;;  %v5602_v21 = vand.u32 4294901760, %v5028_v48  ;;  %v1576_v22 = vld [vmem:[#allocation8 + $0x190] sm:$0xff]  ;;  %v5603_v18 = vand.u32 4294901760, %v4795_v55  ;;  %v2686_v54 = vand.u32 4294901760, %v2685_v34 }
 0x170   :  { %2522 = vmatpush.msra.mxu0 %v5601_v28  ;;  %2620 = vmatpush.msra.mxu2 %v4907_v25  ;;  %v1519_v13 = vpop.f32.mrf.mxu3  ;;  %v2708_v28 = vand.u32 4294901760, %v5059_v51  ;;  %v5083_v31 = vsub.f32 %v1579_v2, %v5061_v36  ;;  %v5085_v58 = vand.u32 4294901760, %v1577_v56  ;;  %v5604_v55 = vand.u32 4294901760, %v4810_v12 }
 0x171   :  { %2675 = vmatpush.msra.mxu3 %v2674_v26  ;;  %v2697_v16 = vsub.f32 %v5028_v48, %v5602_v21  ;;  %2406 = vmatpush.msrb.mxu1 %v2405_v44  ;;  %v2703_v26 = vsub.f32 %v5040_v45, %v5432_v29  ;;  %v2714_v44 = vand.u32 4294901760, %v5066_v33  ;;  %v1575_v21 = vld [vmem:[#allocation8 + $0x188] sm:$0xff]  ;;  %v2692_v34 = vand.u32 4294901760, %v2691_v37  ;;  %v1574_v29 = vld [vmem:[#allocation8 + $0x180] sm:$0xff] }
 0x172   :  { %2526 = vmatpush.msra.mxu0 %v5603_v18  ;;  %2622 = vmatpush.msra.mxu2 %v4934_v62  ;;  %v1520_v18 = vadd.f32 %v1519_v13, %v1483_v43  ;;  %v5095_v2 = vsub.f32 %v1578_v20, %v5073_v39  ;;  %v5097_v46 = vand.u32 4294901760, %v1576_v22  ;;  %v2709_v12 = vsub.f32 %v5059_v51, %v2708_v28 }
 0x173   :  { %2681 = vmatpush.msra.mxu3 %v2680_v14  ;;  %2412 = vmatpush.msrb.mxu1 %v2411_v11  ;;  %v2698_v14 = vand.u32 4294901760, %v2697_v16  ;;  %v2720_v11 = vand.u32 4294901760, %v5083_v31  ;;  %v5107_v20 = vsub.f32 %v1577_v56, %v5085_v58  ;;  %v5109_v37 = vand.u32 4294901760, %v1575_v21 }
 0x174   :  { %2530 = vmatpush.msra.mxu0 %v5604_v55  ;;  %2414 = vmatmul.f32.vlgmr.msrb.gmra.mxu1 %v4895_v57  ;;  %v5605_v43 = vand.u32 4294901760, %v4822_v23  ;;  %v2704_v16 = vand.u32 4294901760, %v2703_v26  ;;  %v1525_v13 = vmax.f32 %v1520_v18, 0.0  ;;  %v5120_v56 = vsub.f32 %v1576_v22, %v5097_v46 }
 0x175   :  { %2624 = vmatpush.msra.mxu2 %v4945_v0  ;;  %2581 = vmatpush.msra.mxu1 %v4750_v6  ;;  %v2715_v6 = vsub.f32 %v5066_v33, %v2714_v44  ;;  %v5122_v55 = vand.u32 4294901760, %v1574_v29  ;;  %v5606_v23 = vand.u32 4294901760, %v4835_v3  ;;  %v2710_v26 = vand.u32 4294901760, %v2709_v12 }
 0x176   :  { %2687 = vmatpush.msra.mxu3 %v2686_v54  ;;  %2534 = vmatpush.msra.mxu0 %v5605_v43  ;;  %v2726_v54 = vand.u32 4294901760, %v5095_v2  ;;  %v5133_v22 = vsub.f32 %v1575_v21, %v5109_v37  ;;  %v5607_v18 = vand.u32 4294901760, %v4852_v60  ;;  %v2738_v12 = vand.u32 4294901760, %v5120_v56 }
 0x177   :  { %2626 = vmatpush.msra.mxu2 %v4970_v5  ;;  %2583 = vmatpush.msra.mxu1 %v4757_v49  ;;  %v2721_v49 = vsub.f32 %v5083_v31, %v2720_v11  ;;  %v2716_v3 = vand.u32 4294901760, %v2715_v6  ;;  %v5146_v21 = vsub.f32 %v1574_v29, %v5122_v55  ;;  %v5608_v60 = vand.u32 4294901760, %v4863_v30 }
 0x178   :  { %2693 = vmatpush.msra.mxu3 %v2692_v34  ;;  %2538 = vmatpush.msra.mxu0 %v5606_v23  ;;  %v2732_v34 = vand.u32 4294901760, %v5107_v20  ;;  %v5609_v6 = vand.u32 4294901760, %v4872_v42  ;;  %v2739_v29 = vsub.f32 %v5120_v56, %v2738_v12 }
 0x179   :  { %2628 = vmatpush.msra.mxu2 %v4988_v27  ;;  %2585 = vmatpush.msra.mxu1 %v4762_v40  ;;  %v5139_v40 = vand.u32 4294901760, %v1525_v13  ;;  %v2750_v23 = vand.u32 4294901760, %v5146_v21 }
 0x17a   :  { %2699 = vmatpush.msra.mxu3 %v2698_v14  ;;  %2542 = vmatpush.msra.mxu0 %v5607_v18  ;;  %v2727_v14 = vsub.f32 %v5095_v2, %v2726_v54  ;;  %v2733_v43 = vsub.f32 %v5107_v20, %v2732_v34  ;;  %v5612_v18 = vand.u32 4294901760, %v4912_v32 }
 0x17b   :  { %2630 = vmatpush.msra.mxu2 %v4997_v19  ;;  %2587 = vmatpush.msra.mxu1 %v4777_v63  ;;  %v2722_v63 = vand.u32 4294901760, %v2721_v49  ;;  %v5160_v30 = vsub.f32 %v1525_v13, %v5139_v40  ;;  %v5611_v13 = vand.u32 4294901760, %v4905_v24 }
 0x17c   :  { %2705 = vmatpush.msra.mxu3 %v2704_v16  ;;  %2546 = vmatpush.msra.mxu0 %v5608_v60  ;;  %v2744_v16 = vand.u32 4294901760, %v5133_v22  ;;  %v2734_v42 = vand.u32 4294901760, %v2733_v43  ;;  %v5622_v43 = vld [vmem:[#allocation20_spill] sm:$0xff] }
 0x17d   :  { %2632 = vmatpush.msra.mxu2 %v5009_v41  ;;  %2589 = vmatpush.msra.mxu1 %v4787_v38  ;;  %v2728_v38 = vand.u32 4294901760, %v2727_v14  ;;  %v2651_v49 = vand.u32 4294901760, %v5160_v30  ;;  %v5614_v14 = vand.u32 4294901760, %v4960_v9  ;;  %v5618_v9 = vld [vmem:[#allocation21_spill] sm:$0xff] }
 0x17e   :  { %2711 = vmatpush.msra.mxu3 %v2710_v26  ;;  %2550 = vmatpush.msra.mxu0 %v5609_v6  ;;  %v5610_v26 = vand.u32 4294901760, %v4892_v7  ;;  %v2740_v7 = vand.u32 4294901760, %v2739_v29  ;;  %v5625_v29 = vld [vmem:[#allocation23_spill] sm:$0xff] }
 0x17f   :  { %2634 = vmatpush.msra.mxu2 %v5032_v59  ;;  %2591 = vmatpush.msra.mxu1 %v4797_v17  ;;  %v2745_v17 = vsub.f32 %v5133_v22, %v2744_v16 }
 0x180   :  { %2717 = vmatpush.msra.mxu3 %v2716_v3  ;;  %2554 = vmatpush.msra.mxu0 %v5610_v26  ;;  %v5613_v3 = vand.u32 4294901760, %v4952_v47  ;;  %v5616_v47 = vld [vmem:[#allocation19_spill] sm:$0xff]  ;;  %v5626_v26 = vand.u32 4294901760, %v5622_v43 }
 0x181   :  { %2636 = vmatpush.msra.mxu2 %v5042_v35  ;;  %2593 = vmatpush.msra.mxu1 %v4812_v15  ;;  %v2751_v15 = vsub.f32 %v5146_v21, %v2750_v23  ;;  %v2746_v24 = vand.u32 4294901760, %v2745_v17  ;;  %v5628_v17 = vand.u32 4294901760, %v5625_v29 }
 0x182   :  { %2723 = vmatpush.msra.mxu3 %v2722_v63  ;;  %2558 = vmatpush.msra.mxu0 %v5611_v13  ;;  %v5621_v63 = vld [vmem:[#allocation24_spill] sm:$0xff]  ;;  %v5629_v13 = vand.u32 4294901760, %v5004_v4 }
 0x183   :  { %2638 = vmatpush.msra.mxu2 %v5061_v36  ;;  %2595 = vmatpush.msra.mxu1 %v4824_v52  ;;  %v2652_v52 = vsub.f32 %v5160_v30, %v2651_v49  ;;  %v2752_v32 = vand.u32 4294901760, %v2751_v15 }
 0x184   :  { %2729 = vmatpush.msra.mxu3 %v2728_v38  ;;  %2562 = vmatpush.msra.mxu0 %v5612_v18  ;;  %v5624_v38 = vld [vmem:[#allocation22_spill] sm:$0xff] }
 0x185   :  { %2640 = vmatpush.msra.mxu2 %v5073_v39  ;;  %2597 = vmatpush.msra.mxu1 %v4837_v1  ;;  %v5615_v1 = vand.u32 4294901760, %v4985_v53  ;;  %v2653_v60 = vand.u32 4294901760, %v2652_v52 }
 0x186   :  { %2735 = vmatpush.msra.mxu3 %v2734_v42  ;;  %2566 = vmatpush.msra.mxu0 %v5613_v3  ;;  %v5627_v42 = vld [vmem:[#allocation26_spill] sm:$0xff] }
 0x187   :  { %2642 = vmatpush.msra.mxu2 %v5085_v58  ;;  %2599 = vmatpush.msra.mxu1 %v4844_v61  ;;  %v5617_v61 = vld [vmem:[#allocation18_spill] sm:$0xff] }
 0x188   :  { %2741 = vmatpush.msra.mxu3 %v2740_v7  ;;  %2570 = vmatpush.msra.mxu0 %v5614_v14  ;;  %v5620_v53 = vand.u32 4294901760, %v5617_v61 }
 0x189   :  { %2644 = vmatpush.msra.mxu2 %v5097_v46  ;;  %2601 = vmatpush.msra.mxu1 %v4865_v50  ;;  %v5619_v50 = vld [vmem:[#allocation27_spill] sm:$0xff] }
 0x18a   :  { %2747 = vmatpush.msra.mxu3 %v2746_v24  ;;  %2574 = vmatpush.msra.mxu0 %v5615_v1  ;;  %v5623_v6 = vand.u32 4294901760, %v5619_v50 }
 0x18b   :  { %2646 = vmatpush.msra.mxu2 %v5109_v37  ;;  %2603 = vmatpush.msra.mxu1 %v5616_v47 }
 0x18c   :  { %2753 = vmatpush.msra.mxu3 %v2752_v32  ;;  %2576 = vmatmul.f32.vlgmr.msra.gmra.mxu0 %v4895_v57 }
 0x18d   :  { %2755 = vmatmul.f32.vlgmr.msra.gmra.mxu3 %v5139_v40  ;;  %2761 = vmatpush.msrb.mxu0 %v5617_v61 }
 0x18e   :  { %2922 = vmatpush.msrb.mxu3 %v4885_v10  ;;  %2605 = vmatpush.msra.mxu1 %v5618_v9 }
 0x18f   :  { %2648 = vmatpush.msra.mxu2 %v5122_v55  ;;  %2764 = vmatpush.msrb.mxu0 %v5619_v50 }
 0x190   :  { %2654 = vmatmul.f32.vlgmr.msra.gmra.mxu2 %v2653_v60  ;;  %2924 = vmatpush.msrb.mxu3 %v4907_v25 }
 0x191   :  { %2855 = vmatpush.msrb.mxu2 %v5620_v53  ;;  %2607 = vmatpush.msra.mxu1 %v5621_v63 }
 0x192   :  { %2767 = vmatpush.msrb.mxu0 %v5622_v43  ;;  %2926 = vmatpush.msrb.mxu3 %v4934_v62 }
 0x193   :  { %2859 = vmatpush.msrb.mxu2 %v5623_v6  ;;  %2609 = vmatpush.msra.mxu1 %v5624_v38 }
 0x194   :  { %2770 = vmatpush.msrb.mxu0 %v5625_v29  ;;  %2928 = vmatpush.msrb.mxu3 %v4945_v0 }
 0x195   :  { %2863 = vmatpush.msrb.mxu2 %v5626_v26  ;;  %2611 = vmatpush.msra.mxu1 %v5627_v42 }
 0x196   :  { %2773 = vmatpush.msrb.mxu0 %v5004_v4  ;;  %2613 = vmatmul.f32.vlgmr.msra.gmra.mxu1 %v4895_v57  ;;  %v5630_v57 = vand.u32 4294901760, %v5017_v8  ;;  %v5632_v4 = vand.u32 4294901760, %v5040_v45 }
 0x197   :  { %2867 = vmatpush.msrb.mxu2 %v5628_v17  ;;  %2814 = vmatpush.msrb.mxu1 %v4885_v10  ;;  %v5631_v10 = vand.u32 4294901760, %v5028_v48 }
 0x198   :  { %2930 = vmatpush.msrb.mxu3 %v4970_v5  ;;  %2776 = vmatpush.msrb.mxu0 %v5017_v8 }
 0x199   :  { %2871 = vmatpush.msrb.mxu2 %v5629_v13  ;;  %2816 = vmatpush.msrb.mxu1 %v4907_v25  ;;  %v1733_v25 = vpop.f32.mrf.mxu1 }
 0x19a   :  { %2932 = vmatpush.msrb.mxu3 %v4988_v27  ;;  %2779 = vmatpush.msrb.mxu0 %v5028_v48 }
 0x19b   :  { %2875 = vmatpush.msrb.mxu2 %v5630_v57  ;;  %2818 = vmatpush.msrb.mxu1 %v4934_v62 }
 0x19c   :  { %2934 = vmatpush.msrb.mxu3 %v4997_v19  ;;  %2782 = vmatpush.msrb.mxu0 %v5040_v45 }
 0x19d   :  { %2879 = vmatpush.msrb.mxu2 %v5631_v10  ;;  %2820 = vmatpush.msrb.mxu1 %v4945_v0  ;;  %v1826_v0 = vpop.f32.mrf.mxu3 }
 0x19e   :  { %2936 = vmatpush.msrb.mxu3 %v5009_v41  ;;  %2785 = vmatpush.msrb.mxu0 %v5059_v51 }
 0x19f   :  { %2883 = vmatpush.msrb.mxu2 %v5632_v4  ;;  %2822 = vmatpush.msrb.mxu1 %v4970_v5  ;;  %v1632_v5 = vpop.f32.mrf.mxu0 }
 0x1a0   :  { %2938 = vmatpush.msrb.mxu3 %v5032_v59  ;;  %2788 = vmatpush.msrb.mxu0 %v5066_v33 }
 0x1a1   :  { %2887 = vmatpush.msrb.mxu2 %v2708_v28  ;;  %2824 = vmatpush.msrb.mxu1 %v4988_v27  ;;  %v3046_v27 = vld [vmem:[%s5307_s4] ss:$0 sm:$0xff]  ;;  %s3218_s4 = smov [#allocation11]  }
 0x1a2   :  { %2940 = vmatpush.msrb.mxu3 %v5042_v35  ;;  %2791 = vmatpush.msrb.mxu0 %v5083_v31  ;;  %v1633_v8 = vadd.f32 %v3046_v27, %v1632_v5  ;;  %s3015_s19 = sshll.u32 %s3218_s4, 4  ;;  %s3016_s19 = int_to_ptr.vmem [resolvable:$true] %s3015_s19 }
 0x1a3   :  { %2891 = vmatpush.msrb.mxu2 %v2714_v44  ;;  %2826 = vmatpush.msrb.mxu1 %v4997_v19 }
 0x1a4   :  { %2942 = vmatpush.msrb.mxu3 %v5061_v36  ;;  %2794 = vmatpush.msrb.mxu0 %v5095_v2  ;;  %v1734_v62 = vadd.f32 %v1733_v25, %v1633_v8 }
 0x1a5   :  { %2895 = vmatpush.msrb.mxu2 %v2720_v11  ;;  %2828 = vmatpush.msrb.mxu1 %v5009_v41 }
 0x1a6   :  { %2944 = vmatpush.msrb.mxu3 %v5073_v39  ;;  %2797 = vmatpush.msrb.mxu0 %v5107_v20 }
 0x1a7   :  { %2899 = vmatpush.msrb.mxu2 %v2726_v54  ;;  %2830 = vmatpush.msrb.mxu1 %v5032_v59  ;;  %v1787_v59 = vpop.f32.mrf.mxu2  ;;  %v1895_v41 = vpop.f32.mrf.mxu0 }
 0x1a8   :  { %2946 = vmatpush.msrb.mxu3 %v5085_v58  ;;  %2800 = vmatpush.msrb.mxu0 %v5120_v56  ;;  %v1788_v19 = vadd.f32 %v1787_v59, %v1734_v62 }
 0x1a9   :  { %2903 = vmatpush.msrb.mxu2 %v2732_v34  ;;  %2832 = vmatpush.msrb.mxu1 %v5042_v35 }
 0x1aa   :  { %2948 = vmatpush.msrb.mxu3 %v5097_v46  ;;  %2803 = vmatpush.msrb.mxu0 %v5133_v22 }
 0x1ab   :  { %2907 = vmatpush.msrb.mxu2 %v2738_v12  ;;  %2834 = vmatpush.msrb.mxu1 %v5061_v36  ;;  %v2074_v36 = vpop.f32.mrf.mxu3 }
 0x1ac   :  { %2950 = vmatpush.msrb.mxu3 %v5109_v37  ;;  %2806 = vmatpush.msrb.mxu0 %v5146_v21 }
 0x1ad   :  { %2911 = vmatpush.msrb.mxu2 %v2744_v16  ;;  %2836 = vmatpush.msrb.mxu1 %v5073_v39  ;;  %v1932_v48 = vpop.f32.mrf.mxu1 }
 0x1ae   :  { %2952 = vmatpush.msrb.mxu3 %v5122_v55  ;;  %2809 = vmatmul.f32.vlgmr.msrb.gmra.mxu0 %v5160_v30 }
 0x1af   :  { %2954 = vmatmul.f32.vlgmr.msrb.gmra.mxu3 %v5139_v40  ;;  %2838 = vmatpush.msrb.mxu1 %v5085_v58  ;;  %v1973_v39 = vpop.f32.mrf.mxu2 }
 0x1b0   :  { %2915 = vmatpush.msrb.mxu2 %v2750_v23 }
 0x1b1   :  { %2917 = vmatmul.f32.vlgmr.msrb.gmra.mxu2 %v5139_v40  ;;  %2840 = vmatpush.msrb.mxu1 %v5097_v46  ;;  %v1827_v46 = vadd.f32 %v1826_v0, %v1788_v19 }
 0x1b3   :  { %2842 = vmatpush.msrb.mxu1 %v5109_v37  ;;  %v1896_v45 = vadd.f32 %v1895_v41, %v1827_v46 }
 0x1b5   :  { %2844 = vmatpush.msrb.mxu1 %v5122_v55  ;;  %v1933_v35 = vadd.f32 %v1932_v48, %v1896_v45 }
 0x1b6   :  { %2848 = vmatmul.f32.vlgmr.msrb.gmra.mxu1 %v2651_v49 }
 0x1b7   :  { %v1974_v51 = vadd.f32 %v1973_v39, %v1933_v35 }
 0x1b9   :  { %v2075_v28 = vadd.f32 %v2074_v36, %v1974_v51 }
 0x1c5   :  { %v2128_v33 = vpop.f32.mrf.mxu0 }
 0x1c6   :  { %v2129_v58 = vadd.f32 %v2128_v33, %v2075_v28 }
 0x1cb   :  { %v2273_v20 = vpop.f32.mrf.mxu3 }
 0x1ce   :  { %v2236_v2 = vpop.f32.mrf.mxu2 }
 0x1cf   :  { %v2167_v31 = vpop.f32.mrf.mxu1 }
 0x1d0   :  { %v2168_v44 = vadd.f32 %v2167_v31, %v2129_v58 }
 0x1d2   :  { %v2237_v11 = vadd.f32 %v2236_v2, %v2168_v44 }
 0x1d4   :  { %v2274_v54 = vadd.f32 %v2273_v20, %v2237_v11 }
 0x1e7   :  { %v2314_v37 = vpop.f32.mrf.mxu0 }
 0x1e8   :  { %v2315_v55 = vadd.f32 %v2314_v37, %v2274_v54 }
 0x1ed   :  { %v2508_v12 = vpop.f32.mrf.mxu3 }
 0x1f0   :  { %v2469_v22 = vpop.f32.mrf.mxu2 }
 0x1f1   :  { %v2415_v56 = vpop.f32.mrf.mxu1 }
 0x1f2   :  { %v2416_v34 = vadd.f32 %v2415_v56, %v2315_v55 }
 0x1f4   :  { %v2470_v40 = vadd.f32 %v2469_v22, %v2416_v34 }
 0x1f6   :  { %v2509_v16 = vadd.f32 %v2508_v12, %v2470_v40 }
 0x209   :  { %v2577_v21 = vpop.f32.mrf.mxu0 }
 0x20a   :  { %v2578_v23 = vadd.f32 %v2577_v21, %v2509_v16 }
 0x210   :  { %v2756_v18 = vpop.f32.mrf.mxu3 }
 0x213   :  { %v2614_v30 = vpop.f32.mrf.mxu1  ;;  %v2655_v7 = vpop.f32.mrf.mxu2 }
 0x214   :  { %v2615_v49 = vadd.f32 %v2614_v30, %v2578_v23 }
 0x216   :  { %v2656_v15 = vadd.f32 %v2655_v7, %v2615_v49 }
 0x218   :  { %v2757_v3 = vadd.f32 %v2756_v18, %v2656_v15 }
 0x22b   :  { %v2810_v24 = vpop.f32.mrf.mxu0 }
 0x22c   :  { %v2811_v52 = vadd.f32 %v2810_v24, %v2757_v3 }
 0x232   :  { %v2955_v60 = vpop.f32.mrf.mxu3 }
 0x233   :  { %v2849_v32 = vpop.f32.mrf.mxu1 }
 0x234   :  { %v2850_v14 = vadd.f32 %v2849_v32, %v2811_v52  ;;  %v2918_v1 = vpop.f32.mrf.mxu2 }
 0x236   :  { %v2919_v47 = vadd.f32 %v2918_v1, %v2850_v14 }
 0x238   :  { %v2956_v61 = vadd.f32 %v2955_v60, %v2919_v47 }
 0x23a   :  { %v3034_v9 = vmul.f32 -2.0, %v2956_v61  ;;  %v3035_v50 = vmul.f32 -1.442695, %v2956_v61 }
 0x23c   :  { %v2960_v53 = vmul.f32 1.442695, %v3034_v9  ;;  %3047 = vpow2.f32 %v3035_v50 }
 0x23e   :  { %3049 = vpow2.f32 %v2960_v53 }
 0x242   :  { %v3048_v63 = vpop.eup %3047 }
 0x243   :  { %v2982_v43 = vadd.f32 1.0, %v3048_v63 }
 0x244   :  { %v3050_v6 = vpop.eup %3049 }
 0x245   :  { %v2962_v38 = vadd.f32 1.0, %v3050_v6  ;;  %3051 = vrcp.f32 %v2982_v43  ;;  %v2994_v57 = vand.u32 2147483648, %v2982_v43  ;;  %v2992_v27 = vand.u32 2147483647, %v2982_v43 }
 0x246   :  { %vm2988_vm1 = vweird.f32 %v2982_v43 }
 0x247   :  { %3053 = vrcp.f32 %v2962_v38  ;;  %v2974_v5 = vand.u32 2147483648, %v2962_v38  ;;  %v2972_v8 = vand.u32 2147483647, %v2962_v38  ;;  %v2995_v59 = vor.u32 1.1754944e-38, %v2994_v57 }
 0x248   :  { %vm2968_vm4 = vweird.f32 %v2962_v38  ;;  %vm2993_vm5 = vcmp.eq.f32.partialorder %v2992_v27, 8.507059e+37 }
 0x249   :  { %v2975_v41 = vor.u32 1.1754944e-38, %v2974_v5  ;;  %vm2973_vm7 = vcmp.eq.f32.partialorder %v2972_v8, 8.507059e+37 }
 0x24b   :  { %v3052_v29 = vpop.eup %3051 }
 0x24c   :  { %v2984_v26 = vmul.f32 %v3052_v29, %v2982_v43  ;;  %vm2989_vm0 = vweird.f32 %v3052_v29 }
 0x24d   :  { %v3054_v42 = vpop.eup %3053  ;;  %vm2990_vm3 = vmor %vm2988_vm1, %vm2989_vm0 }
 0x24e   :  { %v2964_v17 = vmul.f32 %v3054_v42, %v2962_v38  ;;  %v2985_v13 = vsub.f32 1.0, %v2984_v26  ;;  %vm2969_vm2 = vweird.f32 %v3054_v42 }
 0x24f   :  { %vm2970_vm6 = vmor %vm2968_vm4, %vm2969_vm2 }
 0x250   :  { %v2965_v10 = vsub.f32 1.0, %v2964_v17  ;;  %v2986_v4 = vmul.f32 %v3052_v29, %v2985_v13 }
 0x252   :  { %v2966_v25 = vmul.f32 %v3054_v42, %v2965_v10  ;;  %v2987_v62 = vadd.f32 %v3052_v29, %v2986_v4 }
 0x254   :  { %v2967_v19 = vadd.f32 %v3054_v42, %v2966_v25  ;;  %v2991_v0 = vsel %vm2990_vm3, %v3052_v29, %v2987_v62 }
 0x255   :  { %v2996_v46 = vsel %vm2993_vm5, %v2995_v59, %v2991_v0 }
 0x256   :  { %v2971_v48 = vsel %vm2970_vm6, %v3054_v42, %v2967_v19  ;;  %2998 = vst [vmem:[#allocation11] sm:$0xff] %v2996_v46 }
 0x257   :  { %v2976_v45 = vsel %vm2973_vm7, %v2975_v41, %v2971_v48  ;;  %3020 = dma.vmem_to_hbm [thread:$0]  %s3016_s19, 128, %s3018_s22, [#allocation12]  }
 0x258   :  { %2978 = vst [vmem:[#allocation10] sm:$0xff] %v2976_v45 }
 0x259   :  { %3009 = dma.vmem_to_hbm [thread:$0]  %s3005_s24, 128, %s3007_s27, [#allocation4]  }
 0x25a   :  { %3206 = dma.done.wait [#allocation4], 128  }
 0x25b   :  { %3207 = vsyncadd [#allocation4], 4294967168 }
 0x25c   :  { %3208 = dma.done.wait [#allocation12], 128  }
 0x25d   :  { %3209 = vsyncadd [#allocation12], 4294967168 }
 0x25e   :  { %3029 = vsyncpa [#allocation3], 1 }
 0x25f   :  { %3030 = vsyncpa [#allocation6], 1 }
 0x260   :  { %3031 = vsyncpa [#allocation9], 1 }
 0x261   :  { %3032 = vsyncpa [#allocation4], 1 }
 0x262   :  { %3033 = vsyncpa [#allocation12], 1 }

</bundles_post_ra>
